<compile_context>
chip_gen: v7x
topology: tpu7x:2x2x1
jax: 0.10.0
libtpu: 0.0.40
codegen_flags: <defaults>
</compile_context>

<pallas_src>
import functools

import jax
import jax.numpy as jnp
from jax.experimental import pallas as pl
from jax.experimental.pallas import tpu as pltpu

NEG_INF = -1e30


# --------------------------------------------------------------------------
# Fused Pallas kernel: conv1 -> conv2 -> link head
# --------------------------------------------------------------------------
def _net_peg_kernel(scal_ref, pos_ref, post_ref, feat_ref, adj_ref,
                    w1_ref, a1_ref, b1_ref,
                    w2_ref, a2_ref, b2_ref,
                    sel1_ref, sel2_ref, out_ref, *, heads, leaky_slope):
    pos = pos_ref[...]                         # [N, P]
    post = post_ref[...]                       # [P, N]   (transposed in wrapper)
    adj_mask = adj_ref[...] > 0.0              # [N, N]   computed once

    # ---- pairwise positional L2 distance, hoisted (shared by both layers) ----
    gram = jnp.dot(pos, post, preferred_element_type=jnp.float32)     # [N, N]
    sq_col = jnp.sum(pos * pos, axis=1, keepdims=True)                # [N, 1]
    sq_row = jnp.sum(post * post, axis=0, keepdims=True)              # [1, N]
    d2 = jnp.maximum(sq_col + sq_row - 2.0 * gram, 0.0)
    dist = jnp.sqrt(d2)                                               # [N, N]
    # TODO(synk): add an epsilon inside sqrt if a VJP is ever taken (grad at 0).

    inv_heads = 1.0 / float(heads)

    def peg_layer(feat, w_ref, a_ref, b_ref, pe_w, pe_b):
        fout = w_ref.shape[1] // heads
        n = feat.shape[0]
        # PE edge re-weighting (1/heads folded in).
        pew = jax.nn.sigmoid(dist * pe_w + pe_b) * inv_heads          # [N, N]
        # Node transform + fused per-head attention score projection.
        h = jnp.dot(feat, w_ref[...], preferred_element_type=jnp.float32)  # [N, H*Fout]
        s = jnp.dot(feat, a_ref[...], preferred_element_type=jnp.float32)  # [N, 2H] (dst|src)
        st = s.T                                                       # [2H, N] (XLU, once)

        coefs = []
        for hd in range(heads):
            # e[i, j] = LeakyReLU(a_dst.h_i + a_src.h_j)  (i = dst, j = src)
            e = s[:, hd:hd + 1] + st[heads + hd:heads + hd + 1, :]     # VPU broadcast
            e = jnp.where(e > 0, e, leaky_slope * e)
            e = jnp.where(adj_mask, e, NEG_INF)
            m = jnp.max(e, axis=1, keepdims=True)
            # Self-loops guarantee >=1 unmasked entry per row -> m is finite and
            # exp(NEG_INF - m) underflows to exactly 0; no second mask needed.
            p = jnp.exp(e - m)
            inv = pl.reciprocal(jnp.sum(p, axis=1, keepdims=True), approx=True)
            coefs.append(p * inv * pew)                                # alpha * pe_w / H

        # One fused MXU aggregation: [N, H*N] @ [H*N, Fout] sums the heads.
        coef_cat = jnp.concatenate(coefs, axis=1)                      # [N, H*N]
        hblk = jnp.concatenate(
            [h[:, hd * fout:(hd + 1) * fout] for hd in range(heads)], axis=0)  # [H*N, Fout]
        return jnp.dot(coef_cat, hblk,
                       preferred_element_type=jnp.float32) + b_ref[...]

    x1 = peg_layer(feat_ref[...], w1_ref, a1_ref, b1_ref, scal_ref[0], scal_ref[1])
    x2 = peg_layer(x1, w2_ref, a2_ref, b2_ref, scal_ref[2], scal_ref[3])

    # ---- link-prediction head (gathers as one-hot MXU matmuls, fused here) ----
    sel1 = sel1_ref[...]                                               # [Np, N]
    sel2 = sel2_ref[...]
    nf = jnp.dot(sel1, x2, preferred_element_type=jnp.float32)         # [Np, Fout]
    ns = jnp.dot(sel2, x2, preferred_element_type=jnp.float32)
    pf = jnp.dot(sel1, pos, preferred_element_type=jnp.float32)        # [Np, P]
    ps = jnp.dot(sel2, pos, preferred_element_type=jnp.float32)
    pred = jnp.sum(nf * ns, axis=1, keepdims=True)                     # [Np, 1]
    pos_enc = jnp.sum((pf - ps) ** 2, axis=1, keepdims=True)           # [Np, 1]
    # fc = Linear(2, 1): out = w0*pred + w1*pos_enc + b
    out_ref[...] = pred * scal_ref[4] + pos_enc * scal_ref[5] + scal_ref[6]


# --------------------------------------------------------------------------
# Parameter construction + forward wrapper (layout glue in plain JAX)
# --------------------------------------------------------------------------
def init_pegconv_params(key, in_dim, out_dim, heads):
    k = jax.random.split(key, 3)
    W = jax.random.normal(k[0], (in_dim, heads * out_dim), jnp.float32) * 0.1
    att_src = jax.random.normal(k[1], (heads, out_dim), jnp.float32) * 0.1
    att_dst = jax.random.normal(k[2], (heads, out_dim), jnp.float32) * 0.1
    bias = jnp.zeros((1, out_dim), jnp.float32)
    pe = jnp.array([[0.5, 0.1]], jnp.float32)   # Linear(1,1): [weight, bias]
    eyeH = jnp.eye(heads, dtype=jnp.float32)
    # Block-diagonal per-head projections (folded through W in the wrapper).
    Msrc = (att_src[:, :, None] * eyeH[:, None, :]).reshape(heads * out_dim, heads)
    Mdst = (att_dst[:, :, None] * eyeH[:, None, :]).reshape(heads * out_dim, heads)
    return dict(W=W, Msrc=Msrc, Mdst=Mdst, bias=bias, pe=pe)


def net_forward(x, edge_index, idx, params, pos_dim, heads=4, leaky_slope=0.2):
    N = x.shape[0]
    Np = idx.shape[1]
    pos = x[:, :pos_dim]
    feat = x[:, pos_dim:]

    # Dense adjacency: messages flow edge_index[0] (src) -> edge_index[1] (dst);
    # self-loops added (required by the masked-softmax invariant).
    adj = jnp.zeros((N, N), jnp.float32).at[edge_index[1], edge_index[0]].set(1.0)
    adj = jnp.maximum(adj, jnp.eye(N, dtype=jnp.float32))

    def pack(p):
        # Fold the per-head score projections through W: s = feat @ (W @ [Mdst|Msrc]).
        A = jnp.concatenate([p["W"] @ p["Mdst"], p["W"] @ p["Msrc"]], axis=1)
        return p["W"], A.astype(jnp.float32), p["bias"]

    W1, A1, b1 = pack(params["conv1"])
    W2, A2, b2 = pack(params["conv2"])

    # All scalar parameters packed into one small SMEM vector:
    # [pe1_w, pe1_b, pe2_w, pe2_b, fc_w0, fc_w1, fc_b, pad]
    scal = jnp.concatenate([
        params["conv1"]["pe"].reshape(-1),
        params["conv2"]["pe"].reshape(-1),
        params["fc"].reshape(-1),
        jnp.zeros((1,), jnp.float32),
    ]).astype(jnp.float32)

    # One-hot selection matrices: the link-head gathers become MXU matmuls
    # inside the fused kernel (no XLA gather, no extra HBM round trip).
    sel1 = jax.nn.one_hot(idx[0], N, dtype=jnp.float32)
    sel2 = jax.nn.one_hot(idx[1], N, dtype=jnp.float32)

    vm = pl.BlockSpec(memory_space=pltpu.MemorySpace.VMEM)
    sm = pl.BlockSpec(memory_space=pltpu.MemorySpace.SMEM)
    kernel = functools.partial(_net_peg_kernel, heads=heads,
                               leaky_slope=leaky_slope)
    return pl.pallas_call(
        kernel,
        out_shape=jax.ShapeDtypeStruct((Np, 1), jnp.float32),
        in_specs=[sm] + [vm] * 12,
        out_specs=vm,
    )(scal, pos, pos.T, feat, adj, W1, A1, b1, W2, A2, b2, sel1, sel2)


if __name__ == "__main__":
    N, pos_dim, in_feats, hidden, heads = 16, 8, 32, 32, 4
    E, Np = 48, 8

    key = jax.random.PRNGKey(0)
    ks = jax.random.split(key, 6)
    x = jax.random.normal(ks[0], (N, pos_dim + in_feats), jnp.float32)
    edge_index = jax.random.randint(ks[1], (2, E), 0, N, dtype=jnp.int32)
    idx = jax.random.randint(ks[2], (2, Np), 0, N, dtype=jnp.int32)

    params = {
        "conv1": init_pegconv_params(ks[3], in_feats, hidden, heads),
        "conv2": init_pegconv_params(ks[4], hidden, hidden, heads),
        # nn.Linear(2, 1): packed as [[w0, w1, bias]]
        "fc": jnp.concatenate(
            [jax.random.normal(ks[5], (1, 2), jnp.float32) * 0.1,
             jnp.zeros((1, 1), jnp.float32)], axis=1),
    }

    fwd = jax.jit(functools.partial(net_forward, pos_dim=pos_dim, heads=heads))
    out = fwd(x, edge_index, idx, params)
    jax.block_until_ready(out)
    assert out.shape == (Np, 1) and out.dtype == jnp.float32
    assert bool(jnp.all(jnp.isfinite(out)))
    print("KERNEL_OK")
</pallas_src>

<mosaic_0001>
module attributes {stable_mosaic.version = 11 : i64} {
  func.func @_net_peg_kernel(%arg0: memref<8xf32, #tpu.memory_space<smem>>, %arg1: memref<16x8xf32, #tpu.memory_space<vmem>>, %arg2: memref<8x16xf32, #tpu.memory_space<vmem>>, %arg3: memref<16x32xf32, #tpu.memory_space<vmem>>, %arg4: memref<16x16xf32, #tpu.memory_space<vmem>>, %arg5: memref<32x128xf32, #tpu.memory_space<vmem>>, %arg6: memref<32x8xf32, #tpu.memory_space<vmem>>, %arg7: memref<1x32xf32, #tpu.memory_space<vmem>>, %arg8: memref<32x128xf32, #tpu.memory_space<vmem>>, %arg9: memref<32x8xf32, #tpu.memory_space<vmem>>, %arg10: memref<1x32xf32, #tpu.memory_space<vmem>>, %arg11: memref<8x16xf32, #tpu.memory_space<vmem>>, %arg12: memref<8x16xf32, #tpu.memory_space<vmem>>, %arg13: memref<8x1xf32, #tpu.memory_space<vmem>>) attributes {dimension_semantics = [], scalar_prefetch = 0 : i64, scratch_operands = 0 : i64, tpu.core_type = #tpu.core_type<tc>} {
    %c0 = arith.constant 0 : index
    %c0_0 = arith.constant 0 : index
    %0 = vector.load %arg1[%c0, %c0_0] : memref<16x8xf32, #tpu.memory_space<vmem>>, vector<16x8xf32>
    %c0_1 = arith.constant 0 : index
    %c0_2 = arith.constant 0 : index
    %1 = vector.load %arg2[%c0_1, %c0_2] : memref<8x16xf32, #tpu.memory_space<vmem>>, vector<8x16xf32>
    %c0_3 = arith.constant 0 : index
    %c0_4 = arith.constant 0 : index
    %2 = vector.load %arg4[%c0_3, %c0_4] : memref<16x16xf32, #tpu.memory_space<vmem>>, vector<16x16xf32>
    %cst = arith.constant 0.000000e+00 : f32
    %3 = vector.broadcast %cst : f32 to vector<16x16xf32>
    %4 = arith.cmpf ogt, %2, %3 : vector<16x16xf32>
    %cst_5 = arith.constant dense<0.000000e+00> : vector<16x16xf32>
    %5 = tpu.matmul %0, %1, %cst_5 {dimension_numbers = #tpu.dot_dimension_numbers<[1], [0], [0], [1], [0, 0, 1, 1], [], []>} : vector<16x8xf32>, vector<8x16xf32>, vector<16x16xf32> -> vector<16x16xf32>
    %6 = arith.mulf %0, %0 : vector<16x8xf32>
    %cst_6 = arith.constant dense<0.000000e+00> : vector<16xf32>
    %7 = vector.multi_reduction <add>, %6, %cst_6 [1] : vector<16x8xf32> to vector<16xf32>
    %8 = vector.shape_cast %7 : vector<16xf32> to vector<16x1xf32>
    %9 = arith.mulf %1, %1 : vector<8x16xf32>
    %cst_7 = arith.constant dense<0.000000e+00> : vector<16xf32>
    %10 = vector.multi_reduction <add>, %9, %cst_7 [0] : vector<8x16xf32> to vector<16xf32>
    %11 = vector.shape_cast %10 : vector<16xf32> to vector<1x16xf32>
    %12 = vector.broadcast %8 : vector<16x1xf32> to vector<16x16xf32>
    %13 = vector.broadcast %11 : vector<1x16xf32> to vector<16x16xf32>
    %14 = arith.addf %12, %13 : vector<16x16xf32>
    %cst_8 = arith.constant 2.000000e+00 : f32
    %15 = vector.broadcast %cst_8 : f32 to vector<16x16xf32>
    %16 = arith.mulf %15, %5 : vector<16x16xf32>
    %17 = arith.subf %14, %16 : vector<16x16xf32>
    %cst_9 = arith.constant 0.000000e+00 : f32
    %18 = vector.broadcast %cst_9 : f32 to vector<16x16xf32>
    %19 = arith.maximumf %17, %18 : vector<16x16xf32>
    %20 = math.sqrt %19 : vector<16x16xf32>
    %c0_10 = arith.constant 0 : index
    %c0_11 = arith.constant 0 : index
    %21 = vector.load %arg3[%c0_10, %c0_11] : memref<16x32xf32, #tpu.memory_space<vmem>>, vector<16x32xf32>
    %c0_12 = arith.constant 0 : index
    %22 = memref.load %arg0[%c0_12] : memref<8xf32, #tpu.memory_space<smem>>
    %c1 = arith.constant 1 : index
    %23 = memref.load %arg0[%c1] : memref<8xf32, #tpu.memory_space<smem>>
    %24 = vector.broadcast %22 : f32 to vector<16x16xf32>
    %25 = arith.mulf %20, %24 : vector<16x16xf32>
    %26 = vector.broadcast %23 : f32 to vector<16x16xf32>
    %27 = arith.addf %25, %26 : vector<16x16xf32>
    %28 = arith.negf %27 : vector<16x16xf32>
    %29 = math.exp %28 : vector<16x16xf32>
    %cst_13 = arith.constant 1.000000e+00 : f32
    %30 = vector.broadcast %cst_13 : f32 to vector<16x16xf32>
    %31 = arith.addf %30, %29 : vector<16x16xf32>
    %32 = arith.divf %30, %31 : vector<16x16xf32>
    %cst_14 = arith.constant 2.500000e-01 : f32
    %33 = vector.broadcast %cst_14 : f32 to vector<16x16xf32>
    %34 = arith.mulf %32, %33 : vector<16x16xf32>
    %c0_15 = arith.constant 0 : index
    %c0_16 = arith.constant 0 : index
    %35 = vector.load %arg5[%c0_15, %c0_16] : memref<32x128xf32, #tpu.memory_space<vmem>>, vector<32x128xf32>
    %cst_17 = arith.constant dense<0.000000e+00> : vector<16x128xf32>
    %36 = tpu.matmul %21, %35, %cst_17 {dimension_numbers = #tpu.dot_dimension_numbers<[1], [0], [0], [1], [0, 0, 1, 1], [], []>} : vector<16x32xf32>, vector<32x128xf32>, vector<16x128xf32> -> vector<16x128xf32>
    %c0_18 = arith.constant 0 : index
    %c0_19 = arith.constant 0 : index
    %37 = vector.load %arg6[%c0_18, %c0_19] : memref<32x8xf32, #tpu.memory_space<vmem>>, vector<32x8xf32>
    %cst_20 = arith.constant dense<0.000000e+00> : vector<16x8xf32>
    %38 = tpu.matmul %21, %37, %cst_20 {dimension_numbers = #tpu.dot_dimension_numbers<[1], [0], [0], [1], [0, 0, 1, 1], [], []>} : vector<16x32xf32>, vector<32x8xf32>, vector<16x8xf32> -> vector<16x8xf32>
    %39 = tpu.transpose %38, [1, 0] : vector<16x8xf32> -> vector<8x16xf32>
    %40 = vector.extract_strided_slice %38 {offsets = [0, 0], sizes = [16, 1], strides = [1, 1]} : vector<16x8xf32> to vector<16x1xf32>
    %41 = vector.extract_strided_slice %39 {offsets = [4, 0], sizes = [1, 16], strides = [1, 1]} : vector<8x16xf32> to vector<1x16xf32>
    %42 = vector.broadcast %40 : vector<16x1xf32> to vector<16x16xf32>
    %43 = vector.broadcast %41 : vector<1x16xf32> to vector<16x16xf32>
    %44 = arith.addf %42, %43 : vector<16x16xf32>
    %cst_21 = arith.constant 0.000000e+00 : f32
    %45 = vector.broadcast %cst_21 : f32 to vector<16x16xf32>
    %46 = arith.cmpf ogt, %44, %45 : vector<16x16xf32>
    %cst_22 = arith.constant 2.000000e-01 : f32
    %47 = vector.broadcast %cst_22 : f32 to vector<16x16xf32>
    %48 = arith.mulf %47, %44 : vector<16x16xf32>
    %49 = arith.select %46, %44, %48 : vector<16x16xi1>, vector<16x16xf32>
    %cst_23 = arith.constant -1.000000e+30 : f32
    %50 = vector.broadcast %cst_23 : f32 to vector<16x16xf32>
    %51 = arith.select %4, %49, %50 : vector<16x16xi1>, vector<16x16xf32>
    %cst_24 = arith.constant dense<0xFF800000> : vector<16xf32>
    %52 = vector.multi_reduction <maximumf>, %51, %cst_24 [1] : vector<16x16xf32> to vector<16xf32>
    %53 = vector.shape_cast %52 : vector<16xf32> to vector<16x1xf32>
    %54 = vector.broadcast %53 : vector<16x1xf32> to vector<16x16xf32>
    %55 = arith.subf %51, %54 : vector<16x16xf32>
    %56 = math.exp %55 : vector<16x16xf32>
    %cst_25 = arith.constant dense<0.000000e+00> : vector<16xf32>
    %57 = vector.multi_reduction <add>, %56, %cst_25 [1] : vector<16x16xf32> to vector<16xf32>
    %58 = vector.shape_cast %57 : vector<16xf32> to vector<16x1xf32>
    %59 = tpu.reciprocal %58 {approx = true} : vector<16x1xf32> -> vector<16x1xf32>
    %60 = vector.broadcast %59 : vector<16x1xf32> to vector<16x16xf32>
    %61 = arith.mulf %56, %60 : vector<16x16xf32>
    %62 = arith.mulf %61, %34 : vector<16x16xf32>
    %63 = vector.extract_strided_slice %38 {offsets = [0, 1], sizes = [16, 1], strides = [1, 1]} : vector<16x8xf32> to vector<16x1xf32>
    %64 = vector.extract_strided_slice %39 {offsets = [5, 0], sizes = [1, 16], strides = [1, 1]} : vector<8x16xf32> to vector<1x16xf32>
    %65 = vector.broadcast %63 : vector<16x1xf32> to vector<16x16xf32>
    %66 = vector.broadcast %64 : vector<1x16xf32> to vector<16x16xf32>
    %67 = arith.addf %65, %66 : vector<16x16xf32>
    %cst_26 = arith.constant 0.000000e+00 : f32
    %68 = vector.broadcast %cst_26 : f32 to vector<16x16xf32>
    %69 = arith.cmpf ogt, %67, %68 : vector<16x16xf32>
    %cst_27 = arith.constant 2.000000e-01 : f32
    %70 = vector.broadcast %cst_27 : f32 to vector<16x16xf32>
    %71 = arith.mulf %70, %67 : vector<16x16xf32>
    %72 = arith.select %69, %67, %71 : vector<16x16xi1>, vector<16x16xf32>
    %cst_28 = arith.constant -1.000000e+30 : f32
    %73 = vector.broadcast %cst_28 : f32 to vector<16x16xf32>
    %74 = arith.select %4, %72, %73 : vector<16x16xi1>, vector<16x16xf32>
    %cst_29 = arith.constant dense<0xFF800000> : vector<16xf32>
    %75 = vector.multi_reduction <maximumf>, %74, %cst_29 [1] : vector<16x16xf32> to vector<16xf32>
    %76 = vector.shape_cast %75 : vector<16xf32> to vector<16x1xf32>
    %77 = vector.broadcast %76 : vector<16x1xf32> to vector<16x16xf32>
    %78 = arith.subf %74, %77 : vector<16x16xf32>
    %79 = math.exp %78 : vector<16x16xf32>
    %cst_30 = arith.constant dense<0.000000e+00> : vector<16xf32>
    %80 = vector.multi_reduction <add>, %79, %cst_30 [1] : vector<16x16xf32> to vector<16xf32>
    %81 = vector.shape_cast %80 : vector<16xf32> to vector<16x1xf32>
    %82 = tpu.reciprocal %81 {approx = true} : vector<16x1xf32> -> vector<16x1xf32>
    %83 = vector.broadcast %82 : vector<16x1xf32> to vector<16x16xf32>
    %84 = arith.mulf %79, %83 : vector<16x16xf32>
    %85 = arith.mulf %84, %34 : vector<16x16xf32>
    %86 = vector.extract_strided_slice %38 {offsets = [0, 2], sizes = [16, 1], strides = [1, 1]} : vector<16x8xf32> to vector<16x1xf32>
    %87 = vector.extract_strided_slice %39 {offsets = [6, 0], sizes = [1, 16], strides = [1, 1]} : vector<8x16xf32> to vector<1x16xf32>
    %88 = vector.broadcast %86 : vector<16x1xf32> to vector<16x16xf32>
    %89 = vector.broadcast %87 : vector<1x16xf32> to vector<16x16xf32>
    %90 = arith.addf %88, %89 : vector<16x16xf32>
    %cst_31 = arith.constant 0.000000e+00 : f32
    %91 = vector.broadcast %cst_31 : f32 to vector<16x16xf32>
    %92 = arith.cmpf ogt, %90, %91 : vector<16x16xf32>
    %cst_32 = arith.constant 2.000000e-01 : f32
    %93 = vector.broadcast %cst_32 : f32 to vector<16x16xf32>
    %94 = arith.mulf %93, %90 : vector<16x16xf32>
    %95 = arith.select %92, %90, %94 : vector<16x16xi1>, vector<16x16xf32>
    %cst_33 = arith.constant -1.000000e+30 : f32
    %96 = vector.broadcast %cst_33 : f32 to vector<16x16xf32>
    %97 = arith.select %4, %95, %96 : vector<16x16xi1>, vector<16x16xf32>
    %cst_34 = arith.constant dense<0xFF800000> : vector<16xf32>
    %98 = vector.multi_reduction <maximumf>, %97, %cst_34 [1] : vector<16x16xf32> to vector<16xf32>
    %99 = vector.shape_cast %98 : vector<16xf32> to vector<16x1xf32>
    %100 = vector.broadcast %99 : vector<16x1xf32> to vector<16x16xf32>
    %101 = arith.subf %97, %100 : vector<16x16xf32>
    %102 = math.exp %101 : vector<16x16xf32>
    %cst_35 = arith.constant dense<0.000000e+00> : vector<16xf32>
    %103 = vector.multi_reduction <add>, %102, %cst_35 [1] : vector<16x16xf32> to vector<16xf32>
    %104 = vector.shape_cast %103 : vector<16xf32> to vector<16x1xf32>
    %105 = tpu.reciprocal %104 {approx = true} : vector<16x1xf32> -> vector<16x1xf32>
    %106 = vector.broadcast %105 : vector<16x1xf32> to vector<16x16xf32>
    %107 = arith.mulf %102, %106 : vector<16x16xf32>
    %108 = arith.mulf %107, %34 : vector<16x16xf32>
    %109 = vector.extract_strided_slice %38 {offsets = [0, 3], sizes = [16, 1], strides = [1, 1]} : vector<16x8xf32> to vector<16x1xf32>
    %110 = vector.extract_strided_slice %39 {offsets = [7, 0], sizes = [1, 16], strides = [1, 1]} : vector<8x16xf32> to vector<1x16xf32>
    %111 = vector.broadcast %109 : vector<16x1xf32> to vector<16x16xf32>
    %112 = vector.broadcast %110 : vector<1x16xf32> to vector<16x16xf32>
    %113 = arith.addf %111, %112 : vector<16x16xf32>
    %cst_36 = arith.constant 0.000000e+00 : f32
    %114 = vector.broadcast %cst_36 : f32 to vector<16x16xf32>
    %115 = arith.cmpf ogt, %113, %114 : vector<16x16xf32>
    %cst_37 = arith.constant 2.000000e-01 : f32
    %116 = vector.broadcast %cst_37 : f32 to vector<16x16xf32>
    %117 = arith.mulf %116, %113 : vector<16x16xf32>
    %118 = arith.select %115, %113, %117 : vector<16x16xi1>, vector<16x16xf32>
    %cst_38 = arith.constant -1.000000e+30 : f32
    %119 = vector.broadcast %cst_38 : f32 to vector<16x16xf32>
    %120 = arith.select %4, %118, %119 : vector<16x16xi1>, vector<16x16xf32>
    %cst_39 = arith.constant dense<0xFF800000> : vector<16xf32>
    %121 = vector.multi_reduction <maximumf>, %120, %cst_39 [1] : vector<16x16xf32> to vector<16xf32>
    %122 = vector.shape_cast %121 : vector<16xf32> to vector<16x1xf32>
    %123 = vector.broadcast %122 : vector<16x1xf32> to vector<16x16xf32>
    %124 = arith.subf %120, %123 : vector<16x16xf32>
    %125 = math.exp %124 : vector<16x16xf32>
    %cst_40 = arith.constant dense<0.000000e+00> : vector<16xf32>
    %126 = vector.multi_reduction <add>, %125, %cst_40 [1] : vector<16x16xf32> to vector<16xf32>
    %127 = vector.shape_cast %126 : vector<16xf32> to vector<16x1xf32>
    %128 = tpu.reciprocal %127 {approx = true} : vector<16x1xf32> -> vector<16x1xf32>
    %129 = vector.broadcast %128 : vector<16x1xf32> to vector<16x16xf32>
    %130 = arith.mulf %125, %129 : vector<16x16xf32>
    %131 = arith.mulf %130, %34 : vector<16x16xf32>
    %132 = tpu.concatenate %62, %85, %108, %131 in 1 : vector<16x16xf32>, vector<16x16xf32>, vector<16x16xf32>, vector<16x16xf32> -> vector<16x64xf32>
    %133 = vector.extract_strided_slice %36 {offsets = [0, 0], sizes = [16, 32], strides = [1, 1]} : vector<16x128xf32> to vector<16x32xf32>
    %134 = vector.extract_strided_slice %36 {offsets = [0, 32], sizes = [16, 32], strides = [1, 1]} : vector<16x128xf32> to vector<16x32xf32>
    %135 = vector.extract_strided_slice %36 {offsets = [0, 64], sizes = [16, 32], strides = [1, 1]} : vector<16x128xf32> to vector<16x32xf32>
    %136 = vector.extract_strided_slice %36 {offsets = [0, 96], sizes = [16, 32], strides = [1, 1]} : vector<16x128xf32> to vector<16x32xf32>
    %137 = tpu.concatenate %133, %134, %135, %136 in 0 : vector<16x32xf32>, vector<16x32xf32>, vector<16x32xf32>, vector<16x32xf32> -> vector<64x32xf32>
    %cst_41 = arith.constant dense<0.000000e+00> : vector<16x32xf32>
    %138 = tpu.matmul %132, %137, %cst_41 {dimension_numbers = #tpu.dot_dimension_numbers<[1], [0], [0], [1], [0, 0, 1, 1], [], []>} : vector<16x64xf32>, vector<64x32xf32>, vector<16x32xf32> -> vector<16x32xf32>
    %c0_42 = arith.constant 0 : index
    %c0_43 = arith.constant 0 : index
    %139 = vector.load %arg7[%c0_42, %c0_43] : memref<1x32xf32, #tpu.memory_space<vmem>>, vector<1x32xf32>
    %140 = vector.broadcast %139 : vector<1x32xf32> to vector<16x32xf32>
    %141 = arith.addf %138, %140 : vector<16x32xf32>
    %c2 = arith.constant 2 : index
    %142 = memref.load %arg0[%c2] : memref<8xf32, #tpu.memory_space<smem>>
    %c3 = arith.constant 3 : index
    %143 = memref.load %arg0[%c3] : memref<8xf32, #tpu.memory_space<smem>>
    %144 = vector.broadcast %142 : f32 to vector<16x16xf32>
    %145 = arith.mulf %20, %144 : vector<16x16xf32>
    %146 = vector.broadcast %143 : f32 to vector<16x16xf32>
    %147 = arith.addf %145, %146 : vector<16x16xf32>
    %148 = arith.negf %147 : vector<16x16xf32>
    %149 = math.exp %148 : vector<16x16xf32>
    %cst_44 = arith.constant 1.000000e+00 : f32
    %150 = vector.broadcast %cst_44 : f32 to vector<16x16xf32>
    %151 = arith.addf %150, %149 : vector<16x16xf32>
    %152 = arith.divf %150, %151 : vector<16x16xf32>
    %cst_45 = arith.constant 2.500000e-01 : f32
    %153 = vector.broadcast %cst_45 : f32 to vector<16x16xf32>
    %154 = arith.mulf %152, %153 : vector<16x16xf32>
    %c0_46 = arith.constant 0 : index
    %c0_47 = arith.constant 0 : index
    %155 = vector.load %arg8[%c0_46, %c0_47] : memref<32x128xf32, #tpu.memory_space<vmem>>, vector<32x128xf32>
    %cst_48 = arith.constant dense<0.000000e+00> : vector<16x128xf32>
    %156 = tpu.matmul %141, %155, %cst_48 {dimension_numbers = #tpu.dot_dimension_numbers<[1], [0], [0], [1], [0, 0, 1, 1], [], []>} : vector<16x32xf32>, vector<32x128xf32>, vector<16x128xf32> -> vector<16x128xf32>
    %c0_49 = arith.constant 0 : index
    %c0_50 = arith.constant 0 : index
    %157 = vector.load %arg9[%c0_49, %c0_50] : memref<32x8xf32, #tpu.memory_space<vmem>>, vector<32x8xf32>
    %cst_51 = arith.constant dense<0.000000e+00> : vector<16x8xf32>
    %158 = tpu.matmul %141, %157, %cst_51 {dimension_numbers = #tpu.dot_dimension_numbers<[1], [0], [0], [1], [0, 0, 1, 1], [], []>} : vector<16x32xf32>, vector<32x8xf32>, vector<16x8xf32> -> vector<16x8xf32>
    %159 = tpu.transpose %158, [1, 0] : vector<16x8xf32> -> vector<8x16xf32>
    %160 = vector.extract_strided_slice %158 {offsets = [0, 0], sizes = [16, 1], strides = [1, 1]} : vector<16x8xf32> to vector<16x1xf32>
    %161 = vector.extract_strided_slice %159 {offsets = [4, 0], sizes = [1, 16], strides = [1, 1]} : vector<8x16xf32> to vector<1x16xf32>
    %162 = vector.broadcast %160 : vector<16x1xf32> to vector<16x16xf32>
    %163 = vector.broadcast %161 : vector<1x16xf32> to vector<16x16xf32>
    %164 = arith.addf %162, %163 : vector<16x16xf32>
    %cst_52 = arith.constant 0.000000e+00 : f32
    %165 = vector.broadcast %cst_52 : f32 to vector<16x16xf32>
    %166 = arith.cmpf ogt, %164, %165 : vector<16x16xf32>
    %cst_53 = arith.constant 2.000000e-01 : f32
    %167 = vector.broadcast %cst_53 : f32 to vector<16x16xf32>
    %168 = arith.mulf %167, %164 : vector<16x16xf32>
    %169 = arith.select %166, %164, %168 : vector<16x16xi1>, vector<16x16xf32>
    %cst_54 = arith.constant -1.000000e+30 : f32
    %170 = vector.broadcast %cst_54 : f32 to vector<16x16xf32>
    %171 = arith.select %4, %169, %170 : vector<16x16xi1>, vector<16x16xf32>
    %cst_55 = arith.constant dense<0xFF800000> : vector<16xf32>
    %172 = vector.multi_reduction <maximumf>, %171, %cst_55 [1] : vector<16x16xf32> to vector<16xf32>
    %173 = vector.shape_cast %172 : vector<16xf32> to vector<16x1xf32>
    %174 = vector.broadcast %173 : vector<16x1xf32> to vector<16x16xf32>
    %175 = arith.subf %171, %174 : vector<16x16xf32>
    %176 = math.exp %175 : vector<16x16xf32>
    %cst_56 = arith.constant dense<0.000000e+00> : vector<16xf32>
    %177 = vector.multi_reduction <add>, %176, %cst_56 [1] : vector<16x16xf32> to vector<16xf32>
    %178 = vector.shape_cast %177 : vector<16xf32> to vector<16x1xf32>
    %179 = tpu.reciprocal %178 {approx = true} : vector<16x1xf32> -> vector<16x1xf32>
    %180 = vector.broadcast %179 : vector<16x1xf32> to vector<16x16xf32>
    %181 = arith.mulf %176, %180 : vector<16x16xf32>
    %182 = arith.mulf %181, %154 : vector<16x16xf32>
    %183 = vector.extract_strided_slice %158 {offsets = [0, 1], sizes = [16, 1], strides = [1, 1]} : vector<16x8xf32> to vector<16x1xf32>
    %184 = vector.extract_strided_slice %159 {offsets = [5, 0], sizes = [1, 16], strides = [1, 1]} : vector<8x16xf32> to vector<1x16xf32>
    %185 = vector.broadcast %183 : vector<16x1xf32> to vector<16x16xf32>
    %186 = vector.broadcast %184 : vector<1x16xf32> to vector<16x16xf32>
    %187 = arith.addf %185, %186 : vector<16x16xf32>
    %cst_57 = arith.constant 0.000000e+00 : f32
    %188 = vector.broadcast %cst_57 : f32 to vector<16x16xf32>
    %189 = arith.cmpf ogt, %187, %188 : vector<16x16xf32>
    %cst_58 = arith.constant 2.000000e-01 : f32
    %190 = vector.broadcast %cst_58 : f32 to vector<16x16xf32>
    %191 = arith.mulf %190, %187 : vector<16x16xf32>
    %192 = arith.select %189, %187, %191 : vector<16x16xi1>, vector<16x16xf32>
    %cst_59 = arith.constant -1.000000e+30 : f32
    %193 = vector.broadcast %cst_59 : f32 to vector<16x16xf32>
    %194 = arith.select %4, %192, %193 : vector<16x16xi1>, vector<16x16xf32>
    %cst_60 = arith.constant dense<0xFF800000> : vector<16xf32>
    %195 = vector.multi_reduction <maximumf>, %194, %cst_60 [1] : vector<16x16xf32> to vector<16xf32>
    %196 = vector.shape_cast %195 : vector<16xf32> to vector<16x1xf32>
    %197 = vector.broadcast %196 : vector<16x1xf32> to vector<16x16xf32>
    %198 = arith.subf %194, %197 : vector<16x16xf32>
    %199 = math.exp %198 : vector<16x16xf32>
    %cst_61 = arith.constant dense<0.000000e+00> : vector<16xf32>
    %200 = vector.multi_reduction <add>, %199, %cst_61 [1] : vector<16x16xf32> to vector<16xf32>
    %201 = vector.shape_cast %200 : vector<16xf32> to vector<16x1xf32>
    %202 = tpu.reciprocal %201 {approx = true} : vector<16x1xf32> -> vector<16x1xf32>
    %203 = vector.broadcast %202 : vector<16x1xf32> to vector<16x16xf32>
    %204 = arith.mulf %199, %203 : vector<16x16xf32>
    %205 = arith.mulf %204, %154 : vector<16x16xf32>
    %206 = vector.extract_strided_slice %158 {offsets = [0, 2], sizes = [16, 1], strides = [1, 1]} : vector<16x8xf32> to vector<16x1xf32>
    %207 = vector.extract_strided_slice %159 {offsets = [6, 0], sizes = [1, 16], strides = [1, 1]} : vector<8x16xf32> to vector<1x16xf32>
    %208 = vector.broadcast %206 : vector<16x1xf32> to vector<16x16xf32>
    %209 = vector.broadcast %207 : vector<1x16xf32> to vector<16x16xf32>
    %210 = arith.addf %208, %209 : vector<16x16xf32>
    %cst_62 = arith.constant 0.000000e+00 : f32
    %211 = vector.broadcast %cst_62 : f32 to vector<16x16xf32>
    %212 = arith.cmpf ogt, %210, %211 : vector<16x16xf32>
    %cst_63 = arith.constant 2.000000e-01 : f32
    %213 = vector.broadcast %cst_63 : f32 to vector<16x16xf32>
    %214 = arith.mulf %213, %210 : vector<16x16xf32>
    %215 = arith.select %212, %210, %214 : vector<16x16xi1>, vector<16x16xf32>
    %cst_64 = arith.constant -1.000000e+30 : f32
    %216 = vector.broadcast %cst_64 : f32 to vector<16x16xf32>
    %217 = arith.select %4, %215, %216 : vector<16x16xi1>, vector<16x16xf32>
    %cst_65 = arith.constant dense<0xFF800000> : vector<16xf32>
    %218 = vector.multi_reduction <maximumf>, %217, %cst_65 [1] : vector<16x16xf32> to vector<16xf32>
    %219 = vector.shape_cast %218 : vector<16xf32> to vector<16x1xf32>
    %220 = vector.broadcast %219 : vector<16x1xf32> to vector<16x16xf32>
    %221 = arith.subf %217, %220 : vector<16x16xf32>
    %222 = math.exp %221 : vector<16x16xf32>
    %cst_66 = arith.constant dense<0.000000e+00> : vector<16xf32>
    %223 = vector.multi_reduction <add>, %222, %cst_66 [1] : vector<16x16xf32> to vector<16xf32>
    %224 = vector.shape_cast %223 : vector<16xf32> to vector<16x1xf32>
    %225 = tpu.reciprocal %224 {approx = true} : vector<16x1xf32> -> vector<16x1xf32>
    %226 = vector.broadcast %225 : vector<16x1xf32> to vector<16x16xf32>
    %227 = arith.mulf %222, %226 : vector<16x16xf32>
    %228 = arith.mulf %227, %154 : vector<16x16xf32>
    %229 = vector.extract_strided_slice %158 {offsets = [0, 3], sizes = [16, 1], strides = [1, 1]} : vector<16x8xf32> to vector<16x1xf32>
    %230 = vector.extract_strided_slice %159 {offsets = [7, 0], sizes = [1, 16], strides = [1, 1]} : vector<8x16xf32> to vector<1x16xf32>
    %231 = vector.broadcast %229 : vector<16x1xf32> to vector<16x16xf32>
    %232 = vector.broadcast %230 : vector<1x16xf32> to vector<16x16xf32>
    %233 = arith.addf %231, %232 : vector<16x16xf32>
    %cst_67 = arith.constant 0.000000e+00 : f32
    %234 = vector.broadcast %cst_67 : f32 to vector<16x16xf32>
    %235 = arith.cmpf ogt, %233, %234 : vector<16x16xf32>
    %cst_68 = arith.constant 2.000000e-01 : f32
    %236 = vector.broadcast %cst_68 : f32 to vector<16x16xf32>
    %237 = arith.mulf %236, %233 : vector<16x16xf32>
    %238 = arith.select %235, %233, %237 : vector<16x16xi1>, vector<16x16xf32>
    %cst_69 = arith.constant -1.000000e+30 : f32
    %239 = vector.broadcast %cst_69 : f32 to vector<16x16xf32>
    %240 = arith.select %4, %238, %239 : vector<16x16xi1>, vector<16x16xf32>
    %cst_70 = arith.constant dense<0xFF800000> : vector<16xf32>
    %241 = vector.multi_reduction <maximumf>, %240, %cst_70 [1] : vector<16x16xf32> to vector<16xf32>
    %242 = vector.shape_cast %241 : vector<16xf32> to vector<16x1xf32>
    %243 = vector.broadcast %242 : vector<16x1xf32> to vector<16x16xf32>
    %244 = arith.subf %240, %243 : vector<16x16xf32>
    %245 = math.exp %244 : vector<16x16xf32>
    %cst_71 = arith.constant dense<0.000000e+00> : vector<16xf32>
    %246 = vector.multi_reduction <add>, %245, %cst_71 [1] : vector<16x16xf32> to vector<16xf32>
    %247 = vector.shape_cast %246 : vector<16xf32> to vector<16x1xf32>
    %248 = tpu.reciprocal %247 {approx = true} : vector<16x1xf32> -> vector<16x1xf32>
    %249 = vector.broadcast %248 : vector<16x1xf32> to vector<16x16xf32>
    %250 = arith.mulf %245, %249 : vector<16x16xf32>
    %251 = arith.mulf %250, %154 : vector<16x16xf32>
    %252 = tpu.concatenate %182, %205, %228, %251 in 1 : vector<16x16xf32>, vector<16x16xf32>, vector<16x16xf32>, vector<16x16xf32> -> vector<16x64xf32>
    %253 = vector.extract_strided_slice %156 {offsets = [0, 0], sizes = [16, 32], strides = [1, 1]} : vector<16x128xf32> to vector<16x32xf32>
    %254 = vector.extract_strided_slice %156 {offsets = [0, 32], sizes = [16, 32], strides = [1, 1]} : vector<16x128xf32> to vector<16x32xf32>
    %255 = vector.extract_strided_slice %156 {offsets = [0, 64], sizes = [16, 32], strides = [1, 1]} : vector<16x128xf32> to vector<16x32xf32>
    %256 = vector.extract_strided_slice %156 {offsets = [0, 96], sizes = [16, 32], strides = [1, 1]} : vector<16x128xf32> to vector<16x32xf32>
    %257 = tpu.concatenate %253, %254, %255, %256 in 0 : vector<16x32xf32>, vector<16x32xf32>, vector<16x32xf32>, vector<16x32xf32> -> vector<64x32xf32>
    %cst_72 = arith.constant dense<0.000000e+00> : vector<16x32xf32>
    %258 = tpu.matmul %252, %257, %cst_72 {dimension_numbers = #tpu.dot_dimension_numbers<[1], [0], [0], [1], [0, 0, 1, 1], [], []>} : vector<16x64xf32>, vector<64x32xf32>, vector<16x32xf32> -> vector<16x32xf32>
    %c0_73 = arith.constant 0 : index
    %c0_74 = arith.constant 0 : index
    %259 = vector.load %arg10[%c0_73, %c0_74] : memref<1x32xf32, #tpu.memory_space<vmem>>, vector<1x32xf32>
    %260 = vector.broadcast %259 : vector<1x32xf32> to vector<16x32xf32>
    %261 = arith.addf %258, %260 : vector<16x32xf32>
    %c0_75 = arith.constant 0 : index
    %c0_76 = arith.constant 0 : index
    %262 = vector.load %arg11[%c0_75, %c0_76] : memref<8x16xf32, #tpu.memory_space<vmem>>, vector<8x16xf32>
    %c0_77 = arith.constant 0 : index
    %c0_78 = arith.constant 0 : index
    %263 = vector.load %arg12[%c0_77, %c0_78] : memref<8x16xf32, #tpu.memory_space<vmem>>, vector<8x16xf32>
    %cst_79 = arith.constant dense<0.000000e+00> : vector<8x32xf32>
    %264 = tpu.matmul %262, %261, %cst_79 {dimension_numbers = #tpu.dot_dimension_numbers<[1], [0], [0], [1], [0, 0, 1, 1], [], []>} : vector<8x16xf32>, vector<16x32xf32>, vector<8x32xf32> -> vector<8x32xf32>
    %cst_80 = arith.constant dense<0.000000e+00> : vector<8x32xf32>
    %265 = tpu.matmul %263, %261, %cst_80 {dimension_numbers = #tpu.dot_dimension_numbers<[1], [0], [0], [1], [0, 0, 1, 1], [], []>} : vector<8x16xf32>, vector<16x32xf32>, vector<8x32xf32> -> vector<8x32xf32>
    %cst_81 = arith.constant dense<0.000000e+00> : vector<8x8xf32>
    %266 = tpu.matmul %262, %0, %cst_81 {dimension_numbers = #tpu.dot_dimension_numbers<[1], [0], [0], [1], [0, 0, 1, 1], [], []>} : vector<8x16xf32>, vector<16x8xf32>, vector<8x8xf32> -> vector<8x8xf32>
    %cst_82 = arith.constant dense<0.000000e+00> : vector<8x8xf32>
    %267 = tpu.matmul %263, %0, %cst_82 {dimension_numbers = #tpu.dot_dimension_numbers<[1], [0], [0], [1], [0, 0, 1, 1], [], []>} : vector<8x16xf32>, vector<16x8xf32>, vector<8x8xf32> -> vector<8x8xf32>
    %268 = arith.mulf %264, %265 : vector<8x32xf32>
    %cst_83 = arith.constant dense<0.000000e+00> : vector<8xf32>
    %269 = vector.multi_reduction <add>, %268, %cst_83 [1] : vector<8x32xf32> to vector<8xf32>
    %270 = vector.shape_cast %269 : vector<8xf32> to vector<8x1xf32>
    %271 = arith.subf %266, %267 : vector<8x8xf32>
    %272 = arith.mulf %271, %271 : vector<8x8xf32>
    %cst_84 = arith.constant dense<0.000000e+00> : vector<8xf32>
    %273 = vector.multi_reduction <add>, %272, %cst_84 [1] : vector<8x8xf32> to vector<8xf32>
    %274 = vector.shape_cast %273 : vector<8xf32> to vector<8x1xf32>
    %c4 = arith.constant 4 : index
    %275 = memref.load %arg0[%c4] : memref<8xf32, #tpu.memory_space<smem>>
    %276 = vector.broadcast %275 : f32 to vector<8x1xf32>
    %277 = arith.mulf %270, %276 : vector<8x1xf32>
    %c5 = arith.constant 5 : index
    %278 = memref.load %arg0[%c5] : memref<8xf32, #tpu.memory_space<smem>>
    %279 = vector.broadcast %278 : f32 to vector<8x1xf32>
    %280 = arith.mulf %274, %279 : vector<8x1xf32>
    %281 = arith.addf %277, %280 : vector<8x1xf32>
    %c6 = arith.constant 6 : index
    %282 = memref.load %arg0[%c6] : memref<8xf32, #tpu.memory_space<smem>>
    %283 = vector.broadcast %282 : f32 to vector<8x1xf32>
    %284 = arith.addf %281, %283 : vector<8x1xf32>
    %c0_85 = arith.constant 0 : index
    %c0_86 = arith.constant 0 : index
    %285 = vector.load %arg13[%c0_85, %c0_86] : memref<8x1xf32, #tpu.memory_space<vmem>>, vector<8x1xf32>
    tpu.vector_store %arg13[%c0_85, %c0_86], %284 {strides = array<i32>} : memref<8x1xf32, #tpu.memory_space<vmem>>, vector<8x1xf32>,
    return
  }
}

</mosaic_0001>

<bundles_post_ra>
// kernel: net_forward.1
= control target key start
LH: loop header
LB: loop body
LE: loop exit
PB: predicated region body
PF: predicated region fallthrough
CT: control target
= control target key end

     0   :  { %18 = vsyncpa [#allocation3], 0  ;;  %s2494_s0 = inlined_call_operand.vmem [shape: f32[8], index: 0, kind: input, shape index: {}]   ;;  %s2495_s1 = inlined_call_operand.vmem [shape: f32[16,8], index: 1, kind: input, shape index: {}]   ;;  %s2496_s2 = inlined_call_operand.vmem [shape: f32[8,16], index: 2, kind: input, shape index: {}]   ;;  %s2497_s3 = inlined_call_operand.vmem [shape: f32[16,32], index: 3, kind: input, shape index: {}]   ;;  %s2498_s4 = inlined_call_operand.vmem [shape: f32[16,16], index: 4, kind: input, shape index: {}]   ;;  %s2499_s5 = inlined_call_operand.vmem [shape: f32[32,128], index: 5, kind: input, shape index: {}]   ;;  %s2500_s6 = inlined_call_operand.vmem [shape: f32[32,8], index: 6, kind: input, shape index: {}]   ;;  %s2501_s7 = inlined_call_operand.vmem [shape: f32[1,32], index: 7, kind: input, shape index: {}]   ;;  %s2502_s8 = inlined_call_operand.vmem [shape: f32[32,128], index: 8, kind: input, shape index: {}]   ;;  %s2503_s9 = inlined_call_operand.vmem [shape: f32[32,8], index: 9, kind: input, shape index: {}]   ;;  %s2504_s10 = inlined_call_operand.vmem [shape: f32[1,32], index: 10, kind: input, shape index: {}]   ;;  %s2505_s11 = inlined_call_operand.vmem [shape: f32[8,16], index: 11, kind: input, shape index: {}]   ;;  %s2506_s12 = inlined_call_operand.vmem [shape: f32[8,16], index: 12, kind: input, shape index: {}]   ;;  %s2507_s13 = inlined_call_operand.vmem [shape: f32[8,1], index: 13, kind: output, shape index: {}]  }
   0x1   :  { %s25_s27 = sshll.u32 %s2494_s0, 4  ;;  %s26_s27 = int_to_ptr.vmem [resolvable:$true] %s25_s27 }
   0x2   :  { %s2010_s28 = scalar_lea.vmem %s26_s27, 16  ;;  %p2015_p1 = scmp.lt.s32.totalorder %s26_s27, %s26_s27 }
   0x3   :  { %p2011_p0 = scmp.ne.s32.totalorder %s26_s27, %s2010_s28  ;;  %p2016_p2 = scmp.lt.s32.totalorder %s2010_s28, %s2010_s28 }
   0x5   :  { %p2017_p3 = por %p2016_p2, %p2015_p1 }
   0x7   :  { %p2018_p4 = pnand %p2017_p3, %p2011_p0 }
   0x9   :  { %2021 = shalt.err (!%p2018_p4)
}
   0xa   :  { %s2024_s29 = smov [#allocation2]  }
   0xb   :  { %28 = dma.vmem_to_smem %s26_s27, 16, %s2024_s29, [#allocation3]  }
   0xc   :  { %2022 = dma.done.wait [#allocation3], 16  }
   0xd   :  { %2023 = vsyncadd [#allocation3], 4294967280 }
   0xe   :  { %56 = sfence }
   0xf   :  { %v2113_v0 = vld [vmem:[%s2496_s2] sm:$0xff]  ;;  %vm64_vm0 = vcmask 64512   ;;  %v2123_v2 = vld [vmem:[%s2495_s1 + $0x8] sm:$0xff]  ;;  %v297_v5 = vld [vmem:[%s2500_s6 + $0x10] sm:$0xff]  ;;  %vm213_vm1 = vcmask 261120   ;;  %v2025_v11 = vmov 2   ;;  %v416_v30 = vlaneseq }
  0x10   :  { %v2118_v1 = vld [vmem:[%s2495_s1] sm:$0xff]  ;;  %1677 = vmatprep.subr.mxu0 %v2113_v0  ;;  %v296_v4 = vld [vmem:[%s2500_s6 + $0x8] sm:$0xff]  ;;  %v298_v7 = vld [vmem:[%s2500_s6 + $0x18] sm:$0xff]  ;;  %1882 = vset.pattern.permute.xlu1 %v2025_v11  ;;  %v2026_v12 = vmov 1   ;;  %v2027_v23 = vmov 3   ;;  %v2028_v24 = vmov 0  }
  0x11   :  { %1679 = vmatprep.mubr.msk.f32.mxu0 %vm64_vm0, %v2118_v1  ;;  %v295_v3 = vld [vmem:[%s2500_s6] sm:$0xff]  ;;  %1678 = vmatpush3.msra.mxu0 %v2113_v0  ;;  %v1804_v9 = vpack.c.bf16 %v298_v7, %v297_v5  ;;  %v186_v10 = vld [vmem:[%s2497_s3 + $0x8] sm:$0xff]  ;;  %v211_v15 = vld [vmem:[%s2499_s5 + $0x10] sm:$0xff]  ;;  %v2178_v32 = vshrl.u32 %v416_v30, 7  ;;  %vm155_vm5 = vcmask 130048   ;;  %s2030_s2 = smov 32  }
  0x12   :  { %v1800_v6 = vpack.c.bf16 %v296_v4, %v295_v3  ;;  %v185_v8 = vld [vmem:[%s2497_s3] sm:$0xff]  ;;  %1680 = vmatmul.mubr.msk.f32.vlgmr.msra.gmra.mrb[0].mxu0 %vm64_vm0, %v2123_v2  ;;  %1881 = vset.pattern.permute.xlu0 %v2026_v12  ;;  %v210_v14 = vld [vmem:[%s2499_s5 + $0x8] sm:$0xff]  ;;  %v212_v17 = vld [vmem:[%s2499_s5 + $0x18] sm:$0xff]  ;;  %s2031_s20 = smov 64   ;;  %s187_s21 = sld [smem:[#allocation2]] }
  0x13   :  { %1690 = vmatprep.mubr.msk.f32.mxu1 %vm213_vm1, %v185_v8  ;;  %1701 = vmatprep.mubr.msk.f32.mxu0 %vm213_vm1, %v185_v8  ;;  %v209_v13 = vld [vmem:[%s2499_s5] sm:$0xff]  ;;  %v1796_v18 = vpack.c.bf16 %v212_v17, %v211_v15  ;;  %v464_v35 = vsub.s32 5, %v2178_v32  ;;  %v510_v36 = vsub.s32 6, %v2178_v32  ;;  %v556_v37 = vsub.s32 7, %v2178_v32  ;;  %v2190_v42 = vld [vmem:[%s2498_s4 + $0x8] sm:$0xff]  ;;  %s1590_s22 = sld [smem:[#allocation2 + $0x1]] }
  0x14   :  { %1801 = vmatprep.subr.bf16.mxu0 %v1800_v6  ;;  %v1792_v16 = vpack.c.bf16 %v210_v14, %v209_v13  ;;  %v2197_v46 = vld [vmem:[%s2498_s4] sm:$0xff]  ;;  %vm63_vm2 = vcmp.gt.f32.partialorder %v2190_v42, 0.0  ;;  %v418_v7 = vsub.s32 4, %v2178_v32  ;;  %s2029_s4 = smov 96   ;;  %s2032_s23 = smov 16  }
  0x15   :  { %1803 = vmatpush3.bf16.msra.mxu0 %v1800_v6  ;;  %vm62_vm6 = vcmp.gt.f32.partialorder %v2197_v46, 0.0  ;;  %s2033_s28 = smov 48  }
  0x16   :  { %1805 = vmatprep.subr.bf16.mxu0 %v1804_v9  ;;  %1793 = vmatprep.subr.bf16.mxu1 %v1792_v16 }
  0x17   :  { %1795 = vmatpush3.bf16.msra.mxu1 %v1792_v16 }
  0x18   :  { %1797 = vmatprep.subr.bf16.mxu1 %v1796_v18 }
  0x19   :  { %1807 = vmatpush3.bf16.msra.mxu0 %v1804_v9 }
  0x1b   :  { %1799 = vmatpush3.bf16.msra.mxu1 %v1796_v18 }
  0x1c   :  { %1702 = vmatmul.mubr.msk.f32.vlgmr.msra.gmra.mrb[2].mxu0 %vm213_vm1, %v186_v10 }
  0x1e   :  { %1691 = vmatmul.mubr.msk.f32.vlgmr.msra.gmra.mrb[0].mxu1 %vm213_vm1, %v186_v10 }
  0xe5   :  { %v2167_v19 = vpop.f32.mrb[0].mxu0 }
  0xe6   :  { %v2169_v20 = vpop.f32.mrb[1].mxu0 }
  0xef   :  { %v1703_v21 = vpop.f32.mrb[2].mxu0 }
  0xf0   :  { %505 = vperm.xlu1 %1882, %v1703_v21   ;;  %459 = vperm.xlu0 %1881, %v1703_v21   ;;  %v365_v22 = vpop.f32.mrb[3].mxu0 }
  0xf1   :  { %v1692_v25 = vpop.f32.mrb[0].mxu1 }
  0xf2   :  { %v286_v26 = vpop.f32.mrb[1].mxu1 }
  0xf3   :  { %v2176_v27 = vpack.i.bf16 %v1692_v25, %v286_v26  ;;  %v1808_v28 = vpack.c.bf16 %v1692_v25, %v286_v26 }
  0xf4   :  { %501 = vperm.xlu1 %1882, %v365_v22   ;;  %455 = vperm.xlu0 %1881, %v365_v22  }
  0xf5   :  { %1809 = vmatprep.subr.bf16.mxu1 %v1808_v28 }
  0xf6   :  { %1811 = vmatpush3.bf16.msra.mxu1 %v1808_v28 }
  0xf8   :  { %1884 = vset.pattern.permute.xlu1 %v2027_v23  ;;  %1883 = vset.pattern.permute.xlu0 %v2027_v23 }
  0xf9   :  { %551 = vperm.xlu1 %1884, %v1703_v21   ;;  %547 = vperm.xlu0 %1883, %v365_v22  }
  0xfd   :  { %1885 = vset.pattern.permute.xlu0 %v2028_v24 }
  0xfe   :  { %408 = vperm.xlu0 %1885, %v365_v22  }
 0x102   :  { %413 = vperm.xlu0 %1885, %v1703_v21  }
 0x106   :  { %1901 = vset.pattern.permute.xlu0 %v2026_v12 }
 0x122   :  { %374 = vxpose.xlu1.b32.start [1/2] (short) (narrow) %v365_v22, 8 }
 0x126   :  { %375 = vxpose.xlu1.b32.end [2/2] (short) (narrow) %v1703_v21, 8  ;;  %v146_v21 = vmul.f32 %v2118_v1, %v2118_v1 }
 0x128   :  { %v148_v28 = vsel %vm64_vm0, %v146_v21, 0.0 }
 0x144   :  { %1902 = vset.pattern.permute.xlu1 %v2025_v11 }
 0x16f   :  { %v506_v29 = vpop.permute.xlu1 %505  ;;  %v460_v33 = vpop.permute.xlu0 %459 }
 0x173   :  { %v502_v31 = vpop.permute.xlu1 %501  ;;  %v456_v38 = vpop.permute.xlu0 %455 }
 0x178   :  { %v552_v34 = vpop.permute.xlu1 %551  ;;  %v548_v51 = vpop.permute.xlu0 %547 }
 0x17d   :  { %v409_v16 = vpop.permute.xlu0 %408 }
 0x181   :  { %v414_v26 = vpop.permute.xlu0 %413 }
 0x1a2   :  { %v390_v39 = vpop.trf.xlu1 }
 0x1a3   :  { %v465_v40 = vrot.slane %v390_v39, %v464_v35  ;;  %v511_v41 = vrot.slane %v390_v39, %v510_v36  ;;  %v557_v43 = vrot.slane %v390_v39, %v556_v37  ;;  %v419_v14 = vrot.slane %v390_v39, %v418_v7 }
 0x1a5   :  { %v467_v44 = vadd.f32 %v465_v40, %v460_v33  ;;  %v513_v45 = vadd.f32 %v511_v41, %v506_v29  ;;  %v466_v47 = vadd.f32 %v465_v40, %v456_v38  ;;  %v512_v48 = vadd.f32 %v511_v41, %v502_v31 }
 0x1a6   :  { %v558_v56 = vadd.f32 %v557_v43, %v548_v51  ;;  %v559_v4 = vadd.f32 %v557_v43, %v552_v34  ;;  %v420_v22 = vadd.f32 %v419_v14, %v409_v16  ;;  %v147_v29 = vmul.f32 %v2123_v2, %v2123_v2 }
 0x1a7   :  { %vm469_vm3 = vcmp.gt.f32.partialorder %v467_v44, 0.0  ;;  %v471_v49 = vmul.f32 0.2, %v467_v44  ;;  %vm515_vm4 = vcmp.gt.f32.partialorder %v513_v45, 0.0  ;;  %v517_v50 = vmul.f32 0.2, %v513_v45 }
 0x1a8   :  { %vm468_vm7 = vcmp.gt.f32.partialorder %v466_v47, 0.0  ;;  %v470_v52 = vmul.f32 0.2, %v466_v47  ;;  %v516_v55 = vmul.f32 0.2, %v512_v48  ;;  %vm514_vm8 = vcmp.gt.f32.partialorder %v512_v48, 0.0 }
 0x1a9   :  { %v473_v53 = vsel %vm469_vm3, %v467_v44, %v471_v49  ;;  %v519_v54 = vsel %vm515_vm4, %v513_v45, %v517_v50  ;;  %v562_v3 = vmul.f32 0.2, %v558_v56  ;;  %vm560_vm9 = vcmp.gt.f32.partialorder %v558_v56, 0.0 }
 0x1aa   :  { %v475_v57 = vsel %vm63_vm2, %v473_v53, -1e+30  ;;  %v521_v58 = vsel %vm63_vm2, %v519_v54, -1e+30  ;;  %v472_v59 = vsel %vm468_vm7, %v466_v47, %v470_v52  ;;  %v518_v63 = vsel %vm514_vm8, %v512_v48, %v516_v55 }
 0x1ab   :  { %v479_v60 = vsel %vm155_vm5, %v475_v57, -inf  ;;  %v525_v61 = vsel %vm155_vm5, %v521_v58, -inf  ;;  %v2209_v62 = vsel %vm62_vm6, %v472_v59, -1e+30  ;;  %v2215_v6 = vsel %vm62_vm6, %v518_v63, -1e+30 }
 0x1ac   :  { %480 = vmax.xlane.f32.xlu1 %v479_v60  ;;  %526 = vmax.xlane.f32.xlu0 %v525_v61  ;;  %v476_v5 = vsel %vm155_vm5, %v2209_v62, -inf  ;;  %v564_v8 = vsel %vm560_vm9, %v558_v56, %v562_v3  ;;  %v563_v9 = vmul.f32 0.2, %v559_v4  ;;  %vm561_vm10 = vcmp.gt.f32.partialorder %v559_v4, 0.0 }
 0x1ad   :  { %v522_v10 = vsel %vm155_vm5, %v2215_v6, -inf  ;;  %v2222_v13 = vsel %vm62_vm6, %v564_v8, -1e+30  ;;  %v424_v30 = vmul.f32 0.2, %v420_v22  ;;  %v421_v31 = vadd.f32 %v419_v14, %v414_v26 }
 0x1ae   :  { %v565_v15 = vsel %vm561_vm10, %v559_v4, %v563_v9  ;;  %v568_v17 = vsel %vm155_vm5, %v2222_v13, -inf  ;;  %vm422_vm11 = vcmp.gt.f32.partialorder %v420_v22, 0.0  ;;  %v151_v1 = vsel %vm64_vm0, %v147_v29, 0.0 }
 0x1af   :  { %v2230_v18 = vsel %vm63_vm2, %v565_v15, -1e+30  ;;  %v426_v33 = vsel %vm422_vm11, %v420_v22, %v424_v30  ;;  %v425_v34 = vmul.f32 0.2, %v421_v31  ;;  %vm423_vm12 = vcmp.gt.f32.partialorder %v421_v31, 0.0 }
 0x1b0   :  { %477 = vmax.xlane.f32.xlu0 %v476_v5  ;;  %v571_v25 = vsel %vm155_vm5, %v2230_v18, -inf  ;;  %v2244_v38 = vsel %vm62_vm6, %v426_v33, -1e+30  ;;  %v154_v43 = vmul.f32 %v2113_v0, %v2113_v0  ;;  %v165_v26 = vmul.f32 2.0, %v2169_v20 }
 0x1b1   :  { %v427_v39 = vsel %vm423_vm12, %v421_v31, %v425_v34  ;;  %v430_v2 = vsel %vm155_vm5, %v2244_v38, -inf  ;;  %v166_v34 = vmul.f32 2.0, %v2167_v19  ;;  %vm620_vm4 = vcmask 392192  }
 0x1b2   :  { %v2250_v40 = vsel %vm63_vm2, %v427_v39, -1e+30  ;;  %v156_v44 = vsel %vm155_vm5, %v154_v43, 0.0  ;;  %vm650_vm7 = vcmask 523264  }
 0x1b3   :  { %v433_v41 = vsel %vm155_vm5, %v2250_v40, -inf  ;;  %v157_v45 = vrot.slane %v156_v44, 4 }
 0x1b4   :  { %523 = vmax.xlane.f32.xlu0 %v522_v10 }
 0x1b5   :  { %v158_v49 = vadd.f32 %v157_v45, %v156_v44 }
 0x1b7   :  { %v159_v55 = vrot.slane %v158_v49, 2 }
 0x1b8   :  { %569 = vmax.xlane.f32.xlu0 %v568_v17 }
 0x1b9   :  { %v160_v5 = vadd.f32 %v159_v55, %v158_v49 }
 0x1bb   :  { %v161_v9 = vrot.slane %v160_v5, 1 }
 0x1bc   :  { %572 = vmax.xlane.f32.xlu0 %v571_v25 }
 0x1bd   :  { %1887 = vrot.lane.b32.xlu1 %v2176_v27, %s2029_s4  ;;  %v162_v17 = vadd.f32 %v161_v9, %v160_v5 }
 0x1c0   :  { %149 = vadd.xlane.f32.xlu0 %v148_v28 }
 0x1c4   :  { %152 = vadd.xlane.f32.xlu0 %v151_v1 }
 0x1c8   :  { %431 = vmax.xlane.f32.xlu0 %v430_v2 }
 0x1cc   :  { %434 = vmax.xlane.f32.xlu0 %v433_v41 }
 0x239   :  { %v481_v47 = vpop.xlane.xlu1 %480  ;;  %v527_v48 = vpop.xlane.xlu0 %526 }
 0x23a   :  { %v483_v50 = vsub.f32 %v475_v57, %v481_v47  ;;  %v529_v51 = vsub.f32 %v521_v58, %v527_v48 }
 0x23c   :  { %v486_v52 = vmul.f32 1.442695, %v483_v50  ;;  %v532_v53 = vmul.f32 1.442695, %v529_v51 }
 0x23d   :  { %v478_v54 = vpop.xlane.xlu0 %477  ;;  %v1888_v56 = vpop.permute.xlu1 %1887 }
 0x23e   :  { %1924 = vpow2.f32 %v486_v52  ;;  %v482_v59 = vsub.f32 %v2209_v62, %v478_v54  ;;  %v1890_v60 = vunpack.i.h.bf16 %v1888_v56  ;;  %v1889_v61 = vunpack.i.l.bf16 %v1888_v56 }
 0x23f   :  { %1926 = vpow2.f32 %v532_v53 }
 0x240   :  { %v484_v0 = vmul.f32 1.442695, %v482_v59  ;;  %v1812_v63 = vpack.c.bf16 %v1890_v60, %v1889_v61 }
 0x241   :  { %v524_v3 = vpop.xlane.xlu0 %523 }
 0x242   :  { %v528_v4 = vsub.f32 %v2215_v6, %v524_v3  ;;  %1813 = vmatprep.subr.bf16.mxu1 %v1812_v63  ;;  %1928 = vpow2.f32 %v484_v0  ;;  %v189_v0 = vstv %s187_s21 }
 0x243   :  { %1815 = vmatpush3.bf16.msra.mxu1 %v1812_v63 }
 0x244   :  { %v530_v57 = vmul.f32 1.442695, %v528_v4  ;;  %v192_v4 = vstv %s1590_s22 }
 0x245   :  { %v570_v58 = vpop.xlane.xlu0 %569 }
 0x246   :  { %1930 = vpow2.f32 %v530_v57  ;;  %v574_v8 = vsub.f32 %v2222_v13, %v570_v58 }
 0x248   :  { %v2260_v10 = vpop.eup %1924  ;;  %v576_v62 = vmul.f32 1.442695, %v574_v8 }
 0x249   :  { %v573_v14 = vpop.xlane.xlu0 %572  ;;  %v491_v15 = vsel %vm155_vm5, %v2260_v10, 0.0  ;;  %v2264_v16 = vpop.eup %1926 }
 0x24a   :  { %1932 = vpow2.f32 %v576_v62  ;;  %v575_v6 = vsub.f32 %v2230_v18, %v573_v14  ;;  %492 = vadd.xlane.f32.xlu0 %v491_v15  ;;  %v537_v13 = vsel %vm155_vm5, %v2264_v16, 0.0 }
 0x24c   :  { %v578_v21 = vmul.f32 1.442695, %v575_v6  ;;  %v2269_v25 = vpop.eup %1928 }
 0x24d   :  { %v150_v22 = vpop.xlane.xlu0 %149  ;;  %v488_v18 = vsel %vm155_vm5, %v2269_v25, 0.0 }
 0x24e   :  { %1934 = vpow2.f32 %v578_v21  ;;  %v163_v28 = vadd.f32 %v162_v17, %v150_v22  ;;  %538 = vadd.xlane.f32.xlu0 %v537_v13 }
 0x250   :  { %v2272_v29 = vpop.eup %1930  ;;  %v167_v30 = vsub.f32 %v163_v28, %v165_v26 }
 0x251   :  { %v153_v31 = vpop.xlane.xlu0 %152  ;;  %v534_v1 = vsel %vm155_vm5, %v2272_v29, 0.0 }
 0x252   :  { %v164_v33 = vadd.f32 %v162_v17, %v153_v31  ;;  %489 = vadd.xlane.f32.xlu0 %v488_v18  ;;  %535 = vadd.xlane.f32.xlu1 %v534_v1  ;;  %v169_v54 = vmax.f32 %v167_v30, 0.0 }
 0x254   :  { %v2279_v39 = vpop.eup %1932  ;;  %v168_v20 = vsub.f32 %v164_v33, %v166_v34  ;;  %vm173_vm15 = vcmp.eq.f32.partialorder %v169_v54, inf  ;;  %v176_v5 = vand.u32 2147483648, %v169_v54  ;;  %vm175_vm3 = vcmp.eq.f32.partialorder %v169_v54, 0.0 }
 0x255   :  { %v432_v2 = vpop.xlane.xlu0 %431  ;;  %v580_v41 = vsel %vm155_vm5, %v2279_v39, 0.0 }
 0x256   :  { %581 = vadd.xlane.f32.xlu1 %v580_v41  ;;  %v436_v50 = vsub.f32 %v2244_v38, %v432_v2  ;;  %v170_v53 = vmax.f32 %v168_v20, 0.0 }
 0x258   :  { %v2283_v43 = vpop.eup %1934  ;;  %v438_v51 = vmul.f32 1.442695, %v436_v50  ;;  %vm180_vm13 = vcmp.eq.f32.partialorder %v170_v53, inf  ;;  %v183_v59 = vand.u32 2147483648, %v170_v53  ;;  %vm182_vm14 = vcmp.eq.f32.partialorder %v170_v53, 0.0 }
 0x259   :  { %v435_v44 = vpop.xlane.xlu0 %434  ;;  %v583_v47 = vsel %vm155_vm5, %v2283_v43, 0.0 }
 0x25a   :  { %v437_v45 = vsub.f32 %v2250_v40, %v435_v44  ;;  %584 = vadd.xlane.f32.xlu0 %v583_v47 }
 0x25c   :  { %v440_v48 = vmul.f32 1.442695, %v437_v45 }
 0x25e   :  { %1936 = vpow2.f32 %v440_v48 }
 0x25f   :  { %1938 = vpow2.f32 %v438_v51  ;;  %v755_v51 = vld [vmem:[%s2502_s8 + $0x8] sm:$0xff] }
 0x260   :  { %1940 = vrsqrt.f32 %v170_v53 }
 0x261   :  { %1942 = vrsqrt.f32 %v169_v54 }
 0x267   :  { %1897 = vrot.lane.b32.xlu1 %v2176_v27, %s2030_s2 }
 0x268   :  { %v2290_v19 = vpop.eup %1936 }
 0x269   :  { %v445_v49 = vsel %vm155_vm5, %v2290_v19, 0.0  ;;  %v2297_v40 = vpop.eup %1938 }
 0x26a   :  { %446 = vadd.xlane.f32.xlu0 %v445_v49  ;;  %v442_v52 = vsel %vm155_vm5, %v2297_v40, 0.0  ;;  %v1941_v55 = vpop.eup %1940 }
 0x26b   :  { %v179_v56 = vmul.f32 %v1941_v55, %v170_v53  ;;  %v1943_v60 = vpop.eup %1942 }
 0x26c   :  { %v172_v61 = vmul.f32 %v1943_v60, %v169_v54 }
 0x26d   :  { %v181_v38 = vsel %vm180_vm13, %v170_v53, %v179_v56 }
 0x26e   :  { %v174_v3 = vsel %vm173_vm15, %v169_v54, %v172_v61 }
 0x26f   :  { %v2304_v58 = vsel %vm175_vm3, %v176_v5, %v174_v3 }
 0x270   :  { %v190_v9 = vmul.f32 %v189_v0, %v2304_v58 }
 0x272   :  { %v193_v62 = vadd.f32 %v192_v4, %v190_v9 }
 0x274   :  { %v1591_v14 = vmul.f32 -1.442695, %v193_v62 }
 0x280   :  { %1892 = vrot.lane.b32.xlu0 %v2176_v27, %s2031_s20  ;;  %v2301_v27 = vsel %vm182_vm14, %v183_v59, %v181_v38 }
 0x281   :  { %v191_v63 = vmul.f32 %v189_v0, %v2301_v27 }
 0x283   :  { %v194_v57 = vadd.f32 %v192_v4, %v191_v63 }
 0x285   :  { %v1592_v8 = vmul.f32 -1.442695, %v194_v57 }
 0x287   :  { %1944 = vpow2.f32 %v1592_v8 }
 0x288   :  { %1946 = vpow2.f32 %v1591_v14 }
 0x28b   :  { %443 = vadd.xlane.f32.xlu1 %v442_v52 }
 0x291   :  { %v1945_v15 = vpop.eup %1944 }
 0x292   :  { %v202_v6 = vadd.f32 1.0, %v1945_v15  ;;  %v1947_v21 = vpop.eup %1946 }
 0x293   :  { %v201_v13 = vadd.f32 1.0, %v1947_v21 }
 0x294   :  { %1948 = vrcp.f32 %v202_v6 }
 0x29e   :  { %v1949_v30 = vpop.eup %1948 }
 0x29f   :  { %v208_v1 = vmul.f32 0.25, %v1949_v30 }
 0x2d7   :  { %v493_v17 = vpop.xlane.xlu0 %492 }
 0x2d8   :  { %1950 = vrcp.f32 %v493_v17 }
 0x2db   :  { %v539_v22 = vpop.xlane.xlu0 %538 }
 0x2dc   :  { %1952 = vrcp.f32 %v539_v22 }
 0x2dd   :  { %1954 = vrcp.f32 %v201_v13 }
 0x2df   :  { %v536_v26 = vpop.xlane.xlu1 %535  ;;  %v490_v28 = vpop.xlane.xlu0 %489 }
 0x2e0   :  { %1956 = vrcp.f32 %v536_v26 }
 0x2e1   :  { %1958 = vrcp.f32 %v490_v28 }
 0x2e2   :  { %v1951_v31 = vpop.eup %1950 }
 0x2e3   :  { %v582_v18 = vpop.xlane.xlu1 %581  ;;  %v497_v33 = vmul.f32 %v1951_v31, %v2260_v10  ;;  %v754_v10 = vld [vmem:[%s2502_s8] sm:$0xff] }
 0x2e4   :  { %1960 = vrcp.f32 %v582_v18  ;;  %v1824_v53 = vpack.c.bf16 %v755_v51, %v754_v10 }
 0x2e5   :  { %v499_v34 = vmul.f32 %v497_v33, %v208_v1 }
 0x2e6   :  { %v1953_v20 = vpop.eup %1952  ;;  %1825 = vmatprep.subr.bf16.mxu0 %v1824_v53 }
 0x2e7   :  { %596 = vrot.lane.b32.xlu0 %v499_v34, %s2032_s23  ;;  %v543_v2 = vmul.f32 %v1953_v20, %v2264_v16  ;;  %v585_v41 = vpop.xlane.xlu0 %584  ;;  %v1955_v44 = vpop.eup %1954  ;;  %1827 = vmatpush3.bf16.msra.mxu0 %v1824_v53  ;;  %v757_v34 = vld [vmem:[%s2502_s8 + $0x18] sm:$0xff] }
 0x2e8   :  { %1962 = vrcp.f32 %v585_v41  ;;  %v207_v49 = vmul.f32 0.25, %v1955_v44  ;;  %v840_v41 = vld [vmem:[%s2503_s9 + $0x8] sm:$0xff] }
 0x2e9   :  { %v545_v45 = vmul.f32 %v543_v2, %v208_v1  ;;  %v839_v2 = vld [vmem:[%s2503_s9] sm:$0xff] }
 0x2ea   :  { %v1957_v47 = vpop.eup %1956  ;;  %v1832_v44 = vpack.c.bf16 %v840_v41, %v839_v2 }
 0x2eb   :  { %v1959_v48 = vpop.eup %1958  ;;  %604 = vrot.lane.b32.xlu0 %v545_v45, %s2030_s2  ;;  %v542_v52 = vmul.f32 %v1957_v47, %v2272_v29  ;;  %v1898_v29 = vpop.permute.xlu1 %1897  ;;  %v1597_v45 = vld [vmem:[%s2501_s7] ss:$0 sm:$0xff]  ;;  %s1600_s7 = sld [smem:[#allocation2 + $0x2]] }
 0x2ec   :  { %v496_v50 = vmul.f32 %v1959_v48, %v2269_v25  ;;  %v1900_v63 = vunpack.i.h.bf16 %v1898_v29  ;;  %v1899_v3 = vunpack.i.l.bf16 %v1898_v29  ;;  %v841_v48 = vld [vmem:[%s2503_s9 + $0x10] sm:$0xff] }
 0x2ed   :  { %v544_v55 = vmul.f32 %v542_v52, %v207_v49 }
 0x2ee   :  { %v498_v16 = vmul.f32 %v496_v50, %v207_v49  ;;  %v1961_v54 = vpop.eup %1960  ;;  %v1820_v57 = vpack.c.bf16 %v1900_v63, %v1899_v3 }
 0x2ef   :  { %v588_v25 = vmul.f32 %v1961_v54, %v2279_v39 }
 0x2f0   :  { %594 = vrot.lane.b32.xlu1 %v498_v16, %s2032_s23 }
 0x2f1   :  { %v590_v60 = vmul.f32 %v588_v25, %v207_v49 }
 0x2f2   :  { %v1963_v56 = vpop.eup %1962 }
 0x2f3   :  { %v589_v38 = vmul.f32 %v1963_v56, %v2283_v43 }
 0x2f4   :  { %602 = vrot.lane.b32.xlu1 %v544_v55, %s2030_s2 }
 0x2f5   :  { %v591_v59 = vmul.f32 %v589_v38, %v208_v1 }
 0x2f7   :  { %v447_v61 = vpop.xlane.xlu0 %446  ;;  %612 = vrot.lane.b32.xlu0 %v591_v59, %s2033_s28 }
 0x2f8   :  { %1964 = vrcp.f32 %v447_v61  ;;  %610 = vrot.lane.b32.xlu1 %v590_v60, %s2033_s28 }
 0x2fb   :  { %v1893_v0 = vpop.permute.xlu0 %1892 }
 0x2fc   :  { %v1895_v4 = vunpack.i.h.bf16 %v1893_v0  ;;  %v1894_v39 = vunpack.i.l.bf16 %v1893_v0 }
 0x2fe   :  { %v1816_v5 = vpack.c.bf16 %v1895_v4, %v1894_v39 }
 0x300   :  { %1817 = vmatprep.subr.bf16.mxu1 %v1816_v5 }
 0x301   :  { %1819 = vmatpush3.bf16.msra.mxu1 %v1816_v5 }
 0x302   :  { %v1965_v43 = vpop.eup %1964  ;;  %1821 = vmatprep.subr.bf16.mxu1 %v1820_v57 }
 0x303   :  { %v451_v8 = vmul.f32 %v1965_v43, %v2290_v19 }
 0x305   :  { %1823 = vmatpush3.bf16.msra.mxu1 %v1820_v57  ;;  %v453_v9 = vmul.f32 %v451_v8, %v208_v1 }
 0x318   :  { %v444_v62 = vpop.xlane.xlu1 %443 }
 0x319   :  { %1966 = vrcp.f32 %v444_v62 }
 0x323   :  { %v1967_v14 = vpop.eup %1966 }
 0x324   :  { %v450_v17 = vmul.f32 %v1967_v14, %v2297_v40  ;;  %v756_v40 = vld [vmem:[%s2502_s8 + $0x10] sm:$0xff] }
 0x325   :  { %v1828_v20 = vpack.c.bf16 %v757_v34, %v756_v40 }
 0x326   :  { %v452_v13 = vmul.f32 %v450_v17, %v207_v49  ;;  %v842_v49 = vld [vmem:[%s2503_s9 + $0x18] sm:$0xff]  ;;  %s1601_s9 = sld [smem:[#allocation2 + $0x3]] }
 0x327   :  { %1829 = vmatprep.subr.bf16.mxu0 %v1828_v20  ;;  %v1836_v16 = vpack.c.bf16 %v842_v49, %v841_v48 }
 0x328   :  { %1831 = vmatpush3.bf16.msra.mxu0 %v1828_v20 }
 0x329   :  { %1833 = vmatprep.subr.bf16.mxu0 %v1832_v44 }
 0x359   :  { %v597_v15 = vpop.permute.xlu0 %596 }
 0x35a   :  { %v617_v26 = vsel %vm155_vm5, %v453_v9, %v597_v15 }
 0x35d   :  { %v605_v21 = vpop.permute.xlu0 %604 }
 0x35e   :  { %v619_v19 = vsel %vm213_vm1, %v617_v26, %v605_v21 }
 0x362   :  { %v595_v6 = vpop.permute.xlu1 %594 }
 0x363   :  { %v616_v28 = vsel %vm155_vm5, %v452_v13, %v595_v6 }
 0x366   :  { %v603_v22 = vpop.permute.xlu1 %602 }
 0x367   :  { %v618_v30 = vsel %vm213_vm1, %v616_v28, %v603_v22 }
 0x369   :  { %v613_v31 = vpop.permute.xlu0 %612 }
 0x36a   :  { %v611_v18 = vpop.permute.xlu1 %610  ;;  %v622_v1 = vsel %vm620_vm4, %v619_v19, %v613_v31 }
 0x36b   :  { %v621_v33 = vsel %vm620_vm4, %v618_v30, %v611_v18 }
 0x36c   :  { %1720 = vmatprep.mubr.msk.f32.mxu1 %vm650_vm7, %v621_v33 }
 0x36d   :  { %1721 = vmatmul.mubr.msk.f32.vlgmr.msra.gmra.mrb[2].mxu1 %vm650_vm7, %v622_v1 }
 0x440   :  { %v1722_v47 = vpop.f32.mrb[2].mxu1 }
 0x441   :  { %v723_v50 = vpop.f32.mrb[3].mxu1  ;;  %v729_v51 = vadd.f32 %v1722_v47, %v1597_v45 }
 0x442   :  { %v724_v10 = vadd.f32 %v1597_v45, %v723_v50 }
 0x444   :  { %1731 = vmatprep.mubr.msk.f32.mxu0 %vm213_vm1, %v724_v10 }
 0x445   :  { %1732 = vmatmul.mubr.msk.f32.vlgmr.msra.gmra.mrb[4].mxu0 %vm213_vm1, %v729_v51 }
 0x446   :  { %1835 = vmatpush3.bf16.msra.mxu0 %v1832_v44  ;;  %1742 = vmatprep.mubr.msk.f32.mxu0 %vm213_vm1, %v724_v10 }
 0x447   :  { %1837 = vmatprep.subr.bf16.mxu0 %v1836_v16 }
 0x44a   :  { %1839 = vmatpush3.bf16.msra.mxu0 %v1836_v16 }
 0x44d   :  { %1743 = vmatmul.mubr.msk.f32.vlgmr.msra.gmra.mrb[6].mxu0 %vm213_vm1, %v729_v51 }
 0x518   :  { %v1733_v52 = vpop.f32.mrb[4].mxu0 }
 0x519   :  { %v830_v53 = vpop.f32.mrb[5].mxu0 }
 0x51a   :  { %v1840_v54 = vpack.c.bf16 %v1733_v52, %v830_v53  ;;  %v2360_v55 = vpack.i.bf16 %v1733_v52, %v830_v53 }
 0x51c   :  { %1841 = vmatprep.subr.bf16.mxu1 %v1840_v54 }
 0x51d   :  { %1843 = vmatpush3.bf16.msra.mxu1 %v1840_v54 }
 0x520   :  { %v1744_v25 = vpop.f32.mrb[6].mxu0 }
 0x521   :  { %1049 = vperm.xlu1 %1902, %v1744_v25   ;;  %1003 = vperm.xlu0 %1901, %v1744_v25   ;;  %v909_v56 = vpop.f32.mrb[7].mxu0 }
 0x525   :  { %1903 = vset.pattern.permute.xlu1 %v2026_v12  ;;  %1905 = vset.pattern.permute.xlu0 %v2027_v23 }
 0x526   :  { %1091 = vperm.xlu0 %1905, %v909_v56   ;;  %999 = vperm.xlu1 %1903, %v909_v56  }
 0x52a   :  { %1907 = vset.pattern.permute.xlu0 %v2028_v24  ;;  %1904 = vset.pattern.permute.xlu1 %v2025_v11 }
 0x52b   :  { %952 = vperm.xlu0 %1907, %v909_v56   ;;  %1045 = vperm.xlu1 %1904, %v909_v56  }
 0x52f   :  { %957 = vperm.xlu0 %1907, %v1744_v25   ;;  %1906 = vset.pattern.permute.xlu1 %v2027_v23 }
 0x530   :  { %1095 = vperm.xlu1 %1906, %v1744_v25  }
 0x533   :  { %1923 = vset.pattern.permute.xlu0 %v2027_v23 }
 0x559   :  { %918 = vxpose.xlu1.b32.start [1/2] (short) (narrow) %v909_v56, 8 }
 0x55d   :  { %919 = vxpose.xlu1.b32.end [2/2] (short) (narrow) %v1744_v25, 8 }
 0x5a0   :  { %v1050_v38 = vpop.permute.xlu1 %1049  ;;  %v1004_v61 = vpop.permute.xlu0 %1003 }
 0x5a5   :  { %v1000_v12 = vpop.permute.xlu1 %999  ;;  %v1092_v57 = vpop.permute.xlu0 %1091 }
 0x5aa   :  { %v1046_v59 = vpop.permute.xlu1 %1045  ;;  %v953_v28 = vpop.permute.xlu0 %952 }
 0x5ae   :  { %v958_v40 = vpop.permute.xlu0 %957 }
 0x5af   :  { %v1096_v60 = vpop.permute.xlu1 %1095 }
 0x5d9   :  { %v934_v29 = vpop.trf.xlu1 }
 0x5da   :  { %v1009_v24 = vrot.slane %v934_v29, %v464_v35  ;;  %v1055_v11 = vrot.slane %v934_v29, %v510_v36  ;;  %v1101_v0 = vrot.slane %v934_v29, %v556_v37  ;;  %v963_v21 = vrot.slane %v934_v29, %v418_v7 }
 0x5dc   :  { %v1057_v63 = vadd.f32 %v1055_v11, %v1050_v38  ;;  %v1011_v3 = vadd.f32 %v1009_v24, %v1004_v61  ;;  %v1010_v23 = vadd.f32 %v1009_v24, %v1000_v12  ;;  %v1056_v4 = vadd.f32 %v1055_v11, %v1046_v59 }
 0x5dd   :  { %v1102_v62 = vadd.f32 %v1101_v0, %v1092_v57  ;;  %v1103_v26 = vadd.f32 %v1101_v0, %v1096_v60  ;;  %v964_v1 = vadd.f32 %v963_v21, %v953_v28  ;;  %v965_v20 = vadd.f32 %v963_v21, %v958_v40 }
 0x5de   :  { %vm1059_vm8 = vcmp.gt.f32.partialorder %v1057_v63, 0.0  ;;  %v1061_v39 = vmul.f32 0.2, %v1057_v63  ;;  %vm1013_vm9 = vcmp.gt.f32.partialorder %v1011_v3, 0.0  ;;  %v1015_v5 = vmul.f32 0.2, %v1011_v3 }
 0x5df   :  { %vm1012_vm10 = vcmp.gt.f32.partialorder %v1010_v23, 0.0  ;;  %v1014_v43 = vmul.f32 0.2, %v1010_v23  ;;  %v1060_v35 = vmul.f32 0.2, %v1056_v4  ;;  %vm1058_vm11 = vcmp.gt.f32.partialorder %v1056_v4, 0.0 }
 0x5e0   :  { %v1063_v8 = vsel %vm1059_vm8, %v1057_v63, %v1061_v39  ;;  %v1017_v9 = vsel %vm1013_vm9, %v1011_v3, %v1015_v5  ;;  %v1106_v13 = vmul.f32 0.2, %v1102_v62  ;;  %vm1104_vm12 = vcmp.gt.f32.partialorder %v1102_v62, 0.0 }
 0x5e1   :  { %v1065_v36 = vsel %vm63_vm2, %v1063_v8, -1e+30  ;;  %v1019_v37 = vsel %vm63_vm2, %v1017_v9, -1e+30  ;;  %v1016_v14 = vsel %vm1012_vm10, %v1010_v23, %v1014_v43  ;;  %v1062_v22 = vsel %vm1058_vm11, %v1056_v4, %v1060_v35 }
 0x5e2   :  { %v1069_v15 = vsel %vm155_vm5, %v1065_v36, -inf  ;;  %v1023_v6 = vsel %vm155_vm5, %v1019_v37, -inf  ;;  %v1018_v17 = vsel %vm62_vm6, %v1016_v14, -1e+30  ;;  %v1064_v30 = vsel %vm62_vm6, %v1062_v22, -1e+30 }
 0x5e3   :  { %1070 = vmax.xlane.f32.xlu0 %v1069_v15  ;;  %1024 = vmax.xlane.f32.xlu1 %v1023_v6  ;;  %v1020_v19 = vsel %vm155_vm5, %v1018_v17, -inf  ;;  %v1108_v31 = vsel %vm1104_vm12, %v1102_v62, %v1106_v13  ;;  %v1107_v18 = vmul.f32 0.2, %v1103_v26  ;;  %vm1105_vm13 = vcmp.gt.f32.partialorder %v1103_v26, 0.0 }
 0x5e4   :  { %v1066_v33 = vsel %vm155_vm5, %v1064_v30, -inf  ;;  %v1110_v32 = vsel %vm62_vm6, %v1108_v31, -1e+30  ;;  %v968_v34 = vmul.f32 0.2, %v964_v1  ;;  %vm966_vm14 = vcmp.gt.f32.partialorder %v964_v1, 0.0 }
 0x5e5   :  { %v1109_v7 = vsel %vm1105_vm13, %v1103_v26, %v1107_v18  ;;  %v1112_v2 = vsel %vm155_vm5, %v1110_v32, -inf  ;;  %v969_v45 = vmul.f32 0.2, %v965_v20  ;;  %vm967_vm15 = vcmp.gt.f32.partialorder %v965_v20, 0.0 }
 0x5e6   :  { %v1111_v41 = vsel %vm63_vm2, %v1109_v7, -1e+30  ;;  %v970_v44 = vsel %vm966_vm14, %v964_v1, %v968_v34  ;;  %v734_v1 = vstv %s1600_s7  ;;  %v737_v40 = vstv %s1601_s9 }
 0x5e7   :  { %1021 = vmax.xlane.f32.xlu0 %v1020_v19  ;;  %v1115_v47 = vsel %vm155_vm5, %v1111_v41, -inf  ;;  %v2396_v48 = vsel %vm62_vm6, %v970_v44, -1e+30  ;;  %v971_v49 = vsel %vm967_vm15, %v965_v20, %v969_v45  ;;  %v735_v34 = vmul.f32 %v734_v1, %v2304_v58 }
 0x5e8   :  { %v974_v50 = vsel %vm155_vm5, %v2396_v48, -inf  ;;  %v973_v10 = vsel %vm63_vm2, %v971_v49, -1e+30  ;;  %vm2035_vm2 = vmmov 0  }
 0x5e9   :  { %v977_v51 = vsel %vm155_vm5, %v973_v10, -inf }
 0x5eb   :  { %1067 = vmax.xlane.f32.xlu0 %v1066_v33  ;;  %v736_v33 = vmul.f32 %v734_v1, %v2301_v27 }
 0x5ef   :  { %1113 = vmax.xlane.f32.xlu0 %v1112_v2 }
 0x5f3   :  { %1116 = vmax.xlane.f32.xlu0 %v1115_v47 }
 0x5f4   :  { %1909 = vrot.lane.b32.xlu1 %v2360_v55, %s2029_s4 }
 0x5f7   :  { %975 = vmax.xlane.f32.xlu0 %v974_v50 }
 0x5fb   :  { %978 = vmax.xlane.f32.xlu0 %v977_v51 }
 0x670   :  { %v1071_v16 = vpop.xlane.xlu0 %1070  ;;  %v1025_v52 = vpop.xlane.xlu1 %1024 }
 0x671   :  { %v1073_v53 = vsub.f32 %v1065_v36, %v1071_v16  ;;  %v1027_v46 = vsub.f32 %v1019_v37, %v1025_v52 }
 0x673   :  { %v1030_v54 = vmul.f32 1.442695, %v1027_v46  ;;  %v1076_v25 = vmul.f32 1.442695, %v1073_v53 }
 0x674   :  { %v1910_v56 = vpop.permute.xlu1 %1909  ;;  %v1022_v38 = vpop.xlane.xlu0 %1021 }
 0x675   :  { %v1912_v12 = vunpack.i.h.bf16 %v1910_v56  ;;  %v1911_v59 = vunpack.i.l.bf16 %v1910_v56  ;;  %v1026_v60 = vsub.f32 %v1018_v17, %v1022_v38  ;;  %1968 = vpow2.f32 %v1030_v54 }
 0x676   :  { %1970 = vpow2.f32 %v1076_v25 }
 0x677   :  { %v1844_v61 = vpack.c.bf16 %v1912_v12, %v1911_v59  ;;  %v1028_v29 = vmul.f32 1.442695, %v1026_v60 }
 0x678   :  { %v1068_v42 = vpop.xlane.xlu0 %1067 }
 0x679   :  { %v1072_v24 = vsub.f32 %v1064_v30, %v1068_v42  ;;  %1845 = vmatprep.subr.bf16.mxu1 %v1844_v61  ;;  %1972 = vpow2.f32 %v1028_v29 }
 0x67a   :  { %1847 = vmatpush3.bf16.msra.mxu1 %v1844_v61 }
 0x67b   :  { %v1074_v11 = vmul.f32 1.442695, %v1072_v24 }
 0x67c   :  { %v1114_v0 = vpop.xlane.xlu0 %1113 }
 0x67d   :  { %v1118_v63 = vsub.f32 %v1110_v32, %v1114_v0  ;;  %1974 = vpow2.f32 %v1074_v11  ;;  %v739_v32 = vadd.f32 %v737_v40, %v736_v33 }
 0x67f   :  { %v1120_v3 = vmul.f32 1.442695, %v1118_v63  ;;  %v2405_v23 = vpop.eup %1968  ;;  %v1603_v7 = vmul.f32 -1.442695, %v739_v32 }
 0x680   :  { %v1117_v4 = vpop.xlane.xlu0 %1116  ;;  %v1035_v5 = vsel %vm155_vm5, %v2405_v23, 0.0  ;;  %v2409_v57 = vpop.eup %1970 }
 0x681   :  { %1976 = vpow2.f32 %v1120_v3  ;;  %v1119_v39 = vsub.f32 %v1111_v41, %v1117_v4  ;;  %1036 = vadd.xlane.f32.xlu0 %v1035_v5  ;;  %v1081_v9 = vsel %vm155_vm5, %v2409_v57, 0.0 }
 0x683   :  { %v1122_v43 = vmul.f32 1.442695, %v1119_v39  ;;  %v2413_v35 = vpop.eup %1972 }
 0x684   :  { %v976_v8 = vpop.xlane.xlu0 %975  ;;  %v1032_v37 = vsel %vm155_vm5, %v2413_v35, 0.0 }
 0x685   :  { %1978 = vpow2.f32 %v1122_v43  ;;  %1082 = vadd.xlane.f32.xlu0 %v1081_v9  ;;  %v980_v19 = vsub.f32 %v2396_v48, %v976_v8 }
 0x687   :  { %v2417_v14 = vpop.eup %1974  ;;  %v982_v30 = vmul.f32 1.442695, %v980_v19 }
 0x688   :  { %v979_v62 = vpop.xlane.xlu0 %978  ;;  %v1078_v21 = vsel %vm155_vm5, %v2417_v14, 0.0 }
 0x689   :  { %v981_v36 = vsub.f32 %v973_v10, %v979_v62  ;;  %1033 = vadd.xlane.f32.xlu0 %v1032_v37 }
 0x68b   :  { %v2419_v15 = vpop.eup %1976  ;;  %v984_v6 = vmul.f32 1.442695, %v981_v36 }
 0x68c   :  { %v1124_v17 = vsel %vm155_vm5, %v2419_v15, 0.0 }
 0x68d   :  { %1980 = vpow2.f32 %v984_v6  ;;  %1125 = vadd.xlane.f32.xlu1 %v1124_v17  ;;  %1079 = vadd.xlane.f32.xlu0 %v1078_v21 }
 0x68e   :  { %1982 = vpow2.f32 %v982_v30 }
 0x68f   :  { %v2425_v22 = vpop.eup %1978  ;;  %1984 = vpow2.f32 %v1603_v7 }
 0x690   :  { %v1127_v13 = vsel %vm155_vm5, %v2425_v22, 0.0 }
 0x691   :  { %1128 = vadd.xlane.f32.xlu0 %v1127_v13 }
 0x697   :  { %v2429_v26 = vpop.eup %1980 }
 0x698   :  { %v989_v28 = vsel %vm155_vm5, %v2429_v26, 0.0  ;;  %v2438_v31 = vpop.eup %1982 }
 0x699   :  { %990 = vadd.xlane.f32.xlu0 %v989_v28  ;;  %v986_v18 = vsel %vm155_vm5, %v2438_v31, 0.0  ;;  %v1985_v2 = vpop.eup %1984 }
 0x69a   :  { %v747_v41 = vadd.f32 1.0, %v1985_v2 }
 0x69e   :  { %1919 = vrot.lane.b32.xlu1 %v2360_v55, %s2030_s2 }
 0x6af   :  { %1914 = vrot.lane.b32.xlu0 %v2360_v55, %s2031_s20  ;;  %v738_v55 = vadd.f32 %v737_v40, %v735_v34  ;;  %v2036_v34 = vmov 0.0  }
 0x6b0   :  { %1768 = vmatprep.mubr.msk.f32.mxu0 %vm2035_vm2, %v2036_v34 }
 0x6b1   :  { %v1602_v20 = vmul.f32 -1.442695, %v738_v55  ;;  %v1608_v55 = vld [vmem:[%s2504_s10] ss:$0 sm:$0xff] }
 0x6b3   :  { %1986 = vpow2.f32 %v1602_v20 }
 0x6b4   :  { %1988 = vrcp.f32 %v747_v41 }
 0x6bd   :  { %v1987_v44 = vpop.eup %1986 }
 0x6be   :  { %v746_v47 = vadd.f32 1.0, %v1987_v44  ;;  %v1989_v49 = vpop.eup %1988 }
 0x6bf   :  { %v753_v51 = vmul.f32 0.25, %v1989_v49 }
 0x6c2   :  { %987 = vadd.xlane.f32.xlu1 %v986_v18 }
 0x70e   :  { %v1037_v45 = vpop.xlane.xlu0 %1036 }
 0x70f   :  { %1990 = vrcp.f32 %v1037_v45 }
 0x712   :  { %v1083_v48 = vpop.xlane.xlu0 %1082 }
 0x713   :  { %1992 = vrcp.f32 %v1083_v48  ;;  %v2008_v48 = vld [vmem:[%s2495_s1] sm:$0xff] }
 0x714   :  { %1994 = vrcp.f32 %v746_v47  ;;  %v1274_v47 = vld [vmem:[%s2505_s11] sm:$0xff]  ;;  %s1616_s11 = sld [smem:[#allocation2 + $0x5]] }
 0x716   :  { %v1034_v27 = vpop.xlane.xlu0 %1033 }
 0x717   :  { %1996 = vrcp.f32 %v1034_v27  ;;  %v2009_v27 = vld [vmem:[%s2495_s1 + $0x8] sm:$0xff]  ;;  %s1615_s1 = sld [smem:[#allocation2 + $0x4]] }
 0x718   :  { %v1863_v49 = vpack.c.bf16 %v2009_v27, %v2008_v48 }
 0x719   :  { %v1991_v50 = vpop.eup %1990 }
 0x71a   :  { %v1126_v10 = vpop.xlane.xlu1 %1125  ;;  %v1080_v58 = vpop.xlane.xlu0 %1079  ;;  %v1041_v16 = vmul.f32 %v1991_v50, %v2405_v23  ;;  %v1275_v50 = vld [vmem:[%s2506_s12] sm:$0xff]  ;;  %s1617_s12 = sld [smem:[#allocation2 + $0x6]] }
 0x71b   :  { %1998 = vrcp.f32 %v1126_v10 }
 0x71c   :  { %2000 = vrcp.f32 %v1080_v58  ;;  %v1043_v52 = vmul.f32 %v1041_v16, %v753_v51 }
 0x71d   :  { %v1993_v53 = vpop.eup %1992 }
 0x71e   :  { %1140 = vrot.lane.b32.xlu0 %v1043_v52, %s2032_s23  ;;  %v1129_v46 = vpop.xlane.xlu0 %1128  ;;  %v1087_v54 = vmul.f32 %v1993_v53, %v2409_v57  ;;  %v1995_v25 = vpop.eup %1994 }
 0x71f   :  { %2002 = vrcp.f32 %v1129_v46  ;;  %v752_v12 = vmul.f32 0.25, %v1995_v25  ;;  %v1920_v11 = vpop.permute.xlu1 %1919 }
 0x720   :  { %v1089_v56 = vmul.f32 %v1087_v54, %v753_v51  ;;  %v1922_v57 = vunpack.i.h.bf16 %v1920_v11  ;;  %v1921_v43 = vunpack.i.l.bf16 %v1920_v11 }
 0x721   :  { %v1997_v38 = vpop.eup %1996 }
 0x722   :  { %1148 = vrot.lane.b32.xlu0 %v1089_v56, %s2030_s2  ;;  %v1040_v59 = vmul.f32 %v1997_v38, %v2413_v35  ;;  %v1852_v62 = vpack.c.bf16 %v1922_v57, %v1921_v43 }
 0x724   :  { %v1042_v61 = vmul.f32 %v1040_v59, %v752_v12 }
 0x725   :  { %v1999_v60 = vpop.eup %1998 }
 0x726   :  { %v2001_v29 = vpop.eup %2000  ;;  %v991_v42 = vpop.xlane.xlu0 %990  ;;  %1138 = vrot.lane.b32.xlu1 %v1042_v61, %s2032_s23  ;;  %v1132_v63 = vmul.f32 %v1999_v60, %v2419_v15  ;;  %v1572_v60 = vstv %s1615_s1 }
 0x727   :  { %2004 = vrcp.f32 %v991_v42  ;;  %v1086_v24 = vmul.f32 %v2001_v29, %v2417_v14  ;;  %v1575_v29 = vstv %s1616_s11 }
 0x728   :  { %v1134_v9 = vmul.f32 %v1132_v63, %v752_v12 }
 0x729   :  { %v1088_v0 = vmul.f32 %v1086_v24, %v752_v12  ;;  %v2003_v3 = vpop.eup %2002 }
 0x72a   :  { %v1915_v23 = vpop.permute.xlu0 %1914  ;;  %v1133_v5 = vmul.f32 %v2003_v3, %v2425_v22 }
 0x72b   :  { %1146 = vrot.lane.b32.xlu1 %v1088_v0, %s2030_s2  ;;  %v1917_v4 = vunpack.i.h.bf16 %v1915_v23  ;;  %v1916_v39 = vunpack.i.l.bf16 %v1915_v23  ;;  %v1579_v0 = vstv %s1617_s12 }
 0x72c   :  { %v1135_v35 = vmul.f32 %v1133_v5, %v753_v51 }
 0x72d   :  { %v1848_v8 = vpack.c.bf16 %v1917_v4, %v1916_v39 }
 0x72e   :  { %1156 = vrot.lane.b32.xlu0 %v1135_v35, %s2033_s28 }
 0x72f   :  { %1154 = vrot.lane.b32.xlu1 %v1134_v9, %s2033_s28  ;;  %1849 = vmatprep.subr.bf16.mxu1 %v1848_v8 }
 0x730   :  { %1851 = vmatpush3.bf16.msra.mxu1 %v1848_v8 }
 0x731   :  { %v2005_v36 = vpop.eup %2004  ;;  %1853 = vmatprep.subr.bf16.mxu1 %v1852_v62 }
 0x732   :  { %v995_v37 = vmul.f32 %v2005_v36, %v2429_v26 }
 0x734   :  { %v997_v14 = vmul.f32 %v995_v37, %v753_v51  ;;  %1855 = vmatpush3.bf16.msra.mxu1 %v1852_v62 }
 0x74f   :  { %v988_v15 = vpop.xlane.xlu1 %987 }
 0x750   :  { %2006 = vrcp.f32 %v988_v15 }
 0x75a   :  { %v2007_v6 = vpop.eup %2006 }
 0x75b   :  { %v994_v22 = vmul.f32 %v2007_v6, %v2438_v31  ;;  %v2034_v31 = vmov 0.0|0.0  }
 0x75c   :  { %1856 = vmatprep.subr.bf16.mxu0 %v2034_v31 }
 0x75d   :  { %v996_v19 = vmul.f32 %v994_v22, %v752_v12 }
 0x790   :  { %v1141_v17 = vpop.permute.xlu0 %1140 }
 0x791   :  { %v1161_v30 = vsel %vm155_vm5, %v997_v14, %v1141_v17 }
 0x794   :  { %v1149_v13 = vpop.permute.xlu0 %1148 }
 0x795   :  { %v1163_v1 = vsel %vm213_vm1, %v1161_v30, %v1149_v13 }
 0x798   :  { %v1139_v21 = vpop.permute.xlu1 %1138 }
 0x799   :  { %v1160_v18 = vsel %vm155_vm5, %v996_v19, %v1139_v21 }
 0x79d   :  { %v1147_v28 = vpop.permute.xlu1 %1146 }
 0x79e   :  { %v1162_v26 = vsel %vm213_vm1, %v1160_v18, %v1147_v28 }
 0x7a0   :  { %v1157_v40 = vpop.permute.xlu0 %1156 }
 0x7a1   :  { %v1155_v33 = vpop.permute.xlu1 %1154  ;;  %v1165_v7 = vsel %vm620_vm4, %v1163_v1, %v1157_v40 }
 0x7a2   :  { %v1164_v32 = vsel %vm620_vm4, %v1162_v26, %v1155_v33 }
 0x7a3   :  { %1761 = vmatprep.mubr.msk.f32.mxu1 %vm650_vm7, %v1164_v32 }
 0x7a4   :  { %1762 = vmatmul.mubr.msk.f32.vlgmr.msra.gmra.mrb[4].mxu1 %vm650_vm7, %v1165_v7 }
 0x877   :  { %v1763_v20 = vpop.f32.mrb[4].mxu1 }
 0x878   :  { %v1271_v2 = vadd.f32 %v1763_v20, %v1608_v55  ;;  %v1265_v41 = vpop.f32.mrb[5].mxu1 }
 0x879   :  { %v1266_v44 = vadd.f32 %v1608_v55, %v1265_v41 }
 0x87b   :  { %v1857_v45 = vpack.c.bf16 %v1271_v2, %v1266_v44 }
 0x87d   :  { %1858 = vmatpush3.bf16.msra.mxu0 %v1857_v45 }
 0x87e   :  { %1859 = vmatprep.subr.bf16.mxu0 %v2034_v31 }
 0x880   :  { %1769 = vmatmul.mubr.msk.f32.vlgmr.msra.gmra.mrb[8].mxu0 %vm155_vm5, %v1274_v47 }
 0x881   :  { %1861 = vmatpush3.bf16.msra.mxu0 %v1857_v45  ;;  %1775 = vmatprep.mubr.msk.f32.mxu0 %vm2035_vm2, %v2036_v34 }
 0x882   :  { %1862 = vmatprep.subr.bf16.mxu0 %v2034_v31 }
 0x884   :  { %1776 = vmatmul.mubr.msk.f32.vlgmr.msra.gmra.mrb[10].mxu0 %vm155_vm5, %v1275_v50 }
 0x885   :  { %1864 = vmatpush3.bf16.msra.mxu0 %v1863_v49  ;;  %1782 = vmatprep.mubr.msk.f32.mxu0 %vm2035_vm2, %v2036_v34 }
 0x886   :  { %1865 = vmatprep.subr.bf16.mxu0 %v2034_v31 }
 0x888   :  { %1783 = vmatmul.mubr.msk.f32.vlgmr.msra.gmra.mrb[12].mxu0 %vm155_vm5, %v1274_v47 }
 0x889   :  { %1867 = vmatpush3.bf16.msra.mxu0 %v1863_v49  ;;  %1789 = vmatprep.mubr.msk.f32.mxu0 %vm2035_vm2, %v2036_v34 }
 0x88c   :  { %1790 = vmatmul.mubr.msk.f32.vlgmr.msra.gmra.mrb[14].mxu0 %vm155_vm5, %v1275_v50 }
 0x953   :  { %v1345_v10 = vpop.f32.mrb[8].mxu0 }
 0x954   :  { %v1770_v58 = vpop.f32.mrb[9].mxu0 }
 0x957   :  { %v1418_v51 = vpop.f32.mrb[10].mxu0 }
 0x958   :  { %v1562_v16 = vmul.f32 %v1418_v51, %v1345_v10  ;;  %v1777_v52 = vpop.f32.mrb[11].mxu0 }
 0x95a   :  { %v1563_v53 = vsel %vm213_vm1, %v1562_v16, 0.0  ;;  %vm1581_vm1 = vcmask 7168  }
 0x95b   :  { %1564 = vadd.xlane.f32.xlu1 %v1563_v53  ;;  %v1488_v46 = vpop.f32.mrb[12].mxu0 }
 0x95c   :  { %v1784_v54 = vpop.f32.mrb[13].mxu0 }
 0x95f   :  { %v1558_v25 = vpop.f32.mrb[14].mxu0 }
 0x960   :  { %v1566_v56 = vsub.f32 %v1488_v46, %v1558_v25  ;;  %v1791_v38 = vpop.f32.mrb[15].mxu0 }
 0x962   :  { %v1567_v12 = vmul.f32 %v1566_v56, %v1566_v56 }
 0x964   :  { %v1568_v59 = vsel %vm64_vm0, %v1567_v12, 0.0 }
 0x965   :  { %1569 = vadd.xlane.f32.xlu0 %v1568_v59 }
 0x9e8   :  { %v1565_v61 = vpop.xlane.xlu1 %1564 }
 0x9e9   :  { %v1573_v24 = vmul.f32 %v1572_v60, %v1565_v61 }
 0x9f2   :  { %v1570_v42 = vpop.xlane.xlu0 %1569 }
 0x9f3   :  { %v1576_v11 = vmul.f32 %v1575_v29, %v1570_v42 }
 0x9f5   :  { %v1577_v63 = vadd.f32 %v1576_v11, %v1573_v24 }
 0x9f7   :  { %v1580_v3 = vadd.f32 %v1579_v0, %v1577_v63 }
 0x9f9   :  { %1582 = vst.msk [vmem:[%s2507_s13] sm:$0xff] %vm1581_vm1, %v1580_v3 }
 0x9fa   :  { %1587 = vsyncpa [#allocation3], 1 }

</bundles_post_ra>
